<compile_context>
chip_gen: v7x
topology: tpu7x:2x2x1
jax: 0.10.0
libtpu: 0.0.40
codegen_flags: <defaults>
</compile_context>

<pallas_src>
import math

import jax
import jax.numpy as jnp
from jax.experimental import pallas as pl
from jax.experimental.pallas import tpu as pltpu

BN_SCALE = 1.0 / math.sqrt(1.0 + 1e-5)   # eval-mode BatchNorm with init stats
LN_EPS = 1e-5


def _round_up(x, m):
    return ((x + m - 1) // m) * m


# ----------------------------------------------------------------------------
# Kernel 1: MolConv2 hot path
#   center_ff (1x1 conv -> BN -> sigmoid), dist_ff (pre-scaled, last featn
#   channel -> sigmoid), gated combine w*feat_n + feat_c, update_ff
#   (1x1 conv -> BN -> LeakyReLU 0.02) as ONE k*tm-row matmul, mean over k.
# ----------------------------------------------------------------------------
def _molconv_kernel(featn_ref, featc_ref, wc_ref, wu_ref, o_ref):
    k, tm, c1p1 = featn_ref.shape
    c1 = c1p1 - 1                                   # last channel = pre-scaled dist
    # TODO(synk): keep this elementwise block in bf16 on v6e/v7x (native bf16 VPU);
    # f32 kept here so the same kernel is also correct/fast-enough on v5e.
    fn = featn_ref[...].astype(jnp.float32)         # [k, tm, c1+1]
    w = jax.nn.sigmoid(fn[:, :, c1:])               # [k, tm, 1]   dist gate
    c = jax.nn.sigmoid(                             # center gate  [tm, c1]
        jnp.dot(featc_ref[...], wc_ref[...], preferred_element_type=jnp.float32))
    # gated neighbor features, neighbor-major slab [k*tm, c1] (layout-free reshape)
    f = (w * fn[:, :, :c1] + c[None, :, :]).reshape(k * tm, c1)
    # single fused update_ff matmul over all k*tm rows
    h = jnp.dot(f.astype(jnp.bfloat16), wu_ref[...],
                preferred_element_type=jnp.float32)                 # [k*tm, out]
    h = jnp.where(h >= 0, h, 0.02 * h)                              # LeakyReLU(0.02)
    # TODO(synk): out_dim (~16) < 128 lanes -> masked stores; a channel-major
    # (lane-dense) output layout needs coordinated upstream transposes.
    o_ref[...] = jnp.sum(h.reshape(k, tm, -1), axis=0) * (1.0 / k)  # mean over k


def molconv_pallas(featn_km, featc, wc, wu, *, tm=2048):
    # featn_km: [k, M, c1+1] bf16 (last channel = pre-scaled dist)
    # featc:    [M, dp] bf16
    k, M, c1p1 = featn_km.shape
    c1 = c1p1 - 1
    dp = featc.shape[1]
    out_dim = wu.shape[1]
    tm = min(tm, _round_up(M, 16))            # sublane/bf16-packing friendly tile
    Mp = _round_up(M, tm)
    if Mp != M:
        pad = Mp - M
        featn_km = jnp.pad(featn_km, ((0, 0), (0, pad), (0, 0)))
        featc = jnp.pad(featc, ((0, pad), (0, 0)))
    out = pl.pallas_call(
        _molconv_kernel,
        out_shape=jax.ShapeDtypeStruct((Mp, out_dim), jnp.float32),
        grid=(Mp // tm,),
        in_specs=[
            pl.BlockSpec((k, tm, c1p1), lambda i: (0, i, 0)),
            pl.BlockSpec((tm, dp), lambda i: (i, 0)),
            pl.BlockSpec((dp, c1), lambda i: (0, 0)),
            pl.BlockSpec((c1, out_dim), lambda i: (0, 0)),
        ],
        out_specs=pl.BlockSpec((tm, out_dim), lambda i: (i, 0)),
        compiler_params=pltpu.CompilerParams(
            dimension_semantics=("parallel",),
            vmem_limit_bytes=64 * 1024 * 1024),
    )(featn_km, featc, wc, wu)
    return out[:M]


# ----------------------------------------------------------------------------
# Kernel 2: fused Encoder head + env concat + MSDecoder, tiled over batch.
#   Conv1d 1x1 + BN + LeakyReLU(0.2) as ONE tb*N-row matmul, max/avg pool over
#   points, concat, merge Linear + BN + LeakyReLU(0.2), concat env, then all
#   FCResBlocks (Linear + LayerNorm + LeakyReLU x3, nearest-resized residual
#   via one-hot matmul) and the final Linear(., 1).
# ----------------------------------------------------------------------------
def _make_head_decoder_kernel(num_blocks, add_num):
    def kernel(*refs):
        pos = 2 if add_num > 0 else 1
        x_ref = refs[0]
        env_ref = refs[1] if add_num > 0 else None
        wconv_ref, wm_ref, bm_ref = refs[pos], refs[pos + 1], refs[pos + 2]
        blk = refs[pos + 3: pos + 3 + 4 * num_blocks]
        wfc_ref, bfc_ref, o_ref = refs[-3], refs[-2], refs[-1]

        tb, N, E = x_ref.shape

        def lrelu(v):
            return jnp.where(v >= 0, v, 0.2 * v)

        def ln(v):  # LayerNorm with gamma=1, beta=0 (init values)
            mu = jnp.mean(v, axis=-1, keepdims=True)
            var = jnp.mean((v - mu) ** 2, axis=-1, keepdims=True)
            return (v - mu) * jax.lax.rsqrt(var + LN_EPS)

        # encoder conv (1x1) + folded BN + LeakyReLU(0.2): ONE tb*N-row matmul
        h = jnp.dot(x_ref[...].reshape(tb * N, E), wconv_ref[...],
                    preferred_element_type=jnp.float32)
        h = lrelu(h).reshape(tb, N, E)
        p1 = jnp.max(h, axis=1)                       # adaptive_max_pool1d
        p2 = jnp.mean(h, axis=1)                      # adaptive_avg_pool1d
        p = jnp.concatenate([p1, p2], axis=1)         # [tb, 2E]
        enc = lrelu(jnp.dot(p, wm_ref[...], preferred_element_type=jnp.float32)
                    + bm_ref[...])                    # merge Linear + BN + LReLU
        if add_num > 0:
            enc = jnp.concatenate([enc, env_ref[...]], axis=1)

        # MSDecoder
        # TODO(synk): Dropout is inference-mode identity here.
        hb = enc
        for b in range(num_blocks):
            w1, w2, w3, s = blk[4 * b: 4 * b + 4]
            idres = jnp.dot(hb, s[...], preferred_element_type=jnp.float32)  # nearest resize
            t = lrelu(ln(jnp.dot(hb, w1[...], preferred_element_type=jnp.float32)))
            t = lrelu(ln(jnp.dot(t, w2[...], preferred_element_type=jnp.float32)))
            t = ln(jnp.dot(t, w3[...], preferred_element_type=jnp.float32))
            hb = lrelu(t + idres)
        o_ref[...] = (jnp.dot(hb, wfc_ref[...], preferred_element_type=jnp.float32)
                      + bfc_ref[...])
    return kernel


def head_decoder_pallas(xcat, env2d, params, cfg):
    B, N, E = xcat.shape
    add_num = cfg["add_num"]
    tb = 8 if B >= 8 else B
    Bp = _round_up(B, tb)
    x = xcat.astype(jnp.bfloat16)
    if Bp != B:
        x = jnp.pad(x, ((0, Bp - B), (0, 0), (0, 0)))
        if add_num > 0:
            env2d = jnp.pad(env2d, ((0, Bp - B), (0, 0)))

    args = [x]
    in_specs = [pl.BlockSpec((tb, N, E), lambda i: (i, 0, 0))]
    if add_num > 0:
        args.append(env2d.astype(jnp.float32))
        in_specs.append(pl.BlockSpec((tb, add_num), lambda i: (i, 0)))
    args += [params["wconv"], params["wm"], params["bm"]]
    in_specs += [pl.BlockSpec((E, E), lambda i: (0, 0)),
                 pl.BlockSpec((2 * E, E), lambda i: (0, 0)),
                 pl.BlockSpec((1, E), lambda i: (0, 0))]
    for bp in params["dec"]:
        args += [bp["w1"], bp["w2"], bp["w3"], bp["s"]]
        in_specs += [pl.BlockSpec(bp["w1"].shape, lambda i: (0, 0)),
                     pl.BlockSpec(bp["w2"].shape, lambda i: (0, 0)),
                     pl.BlockSpec(bp["w3"].shape, lambda i: (0, 0)),
                     pl.BlockSpec(bp["s"].shape, lambda i: (0, 0))]
    args += [params["wfc"], params["bfc"]]
    in_specs += [pl.BlockSpec(params["wfc"].shape, lambda i: (0, 0)),
                 pl.BlockSpec(params["bfc"].shape, lambda i: (0, 0))]

    out = pl.pallas_call(
        _make_head_decoder_kernel(len(params["dec"]), add_num),
        out_shape=jax.ShapeDtypeStruct((Bp, 1), jnp.float32),
        grid=(Bp // tb,),
        in_specs=in_specs,
        out_specs=pl.BlockSpec((tb, 1), lambda i: (i, 0)),
        compiler_params=pltpu.CompilerParams(dimension_semantics=("parallel",)),
    )(*args)
    return out[:B]


# ----------------------------------------------------------------------------
# JAX glue: _generate_feat (kNN, gather, gram matrices) — data-dependent
# gather, kept outside the Pallas kernels.  The gather indices are arranged
# so the output is already neighbor-major [k, M, C] (no big transpose after).
# TODO(synk): moving the neighbor gather into the kernel (scalar-prefetched
# idx + manual DMA) would remove the [k,M,C] HBM round-trip entirely.
# ----------------------------------------------------------------------------
def prepare_feats_km(x_cl, idx_base, k, remove_xyz, wd_scale):
    B, N, D = x_cl.shape
    M = B * N
    inner = -2.0 * jnp.einsum("bnd,bmd->bnm", x_cl, x_cl)
    xx = jnp.sum(x_cl ** 2, axis=-1)                        # [B, N]
    pairwise = -xx[:, :, None] - inner - xx[:, None, :]     # -||xi - xj||^2
    neg_d, idx = jax.lax.top_k(pairwise, k)                 # k nearest (incl. self)
    dist = -neg_d                                           # [B, N, k] squared dists
    flat = x_cl.reshape(M, D)
    gidx = idx + idx_base.reshape(B, 1, 1)                  # [B, N, k] global flat idx
    gidx_km = jnp.transpose(gidx, (2, 0, 1)).reshape(k, M)  # neighbor-major order
    gf_km = flat[gidx_km]                                   # [k, M, D]
    # gram channels: <neighbor_j, neighbor_0> outer products, F.normalize(dim=1)
    sub = jnp.einsum("kmd,md->km", gf_km, gf_km[0])         # [k, M]
    sub_gm = (sub[:, :, None] * sub.T[None, :, :]).reshape(k, B, N, k)
    norm = jnp.sqrt(jnp.sum(sub_gm ** 2, axis=2, keepdims=True))   # over points N
    sub_gm = (sub_gm / jnp.maximum(norm, 1e-12)).reshape(k, M, k)
    # pre-scaled dist (dist_ff conv + BN folded) rides as one extra channel
    dist_km = jnp.transpose(dist, (2, 0, 1)).reshape(k, M, 1) * wd_scale
    if remove_xyz:
        feat_n = gf_km[..., 3:]
        feat_c = x_cl[..., 3:].reshape(M, D - 3)
    else:
        feat_n = gf_km
        feat_c = x_cl.reshape(M, D)
    featn_ext = jnp.concatenate([feat_n, sub_gm, dist_km], axis=-1)  # [k, M, c1+1]
    return featn_ext, feat_c


def molconv_layer(x_cl, idx_base, lp, k, remove_xyz):
    B, N, _ = x_cl.shape
    featn_ext, featc = prepare_feats_km(x_cl, idx_base, k, remove_xyz, lp["wd_scale"])
    out = molconv_pallas(featn_ext.astype(jnp.bfloat16),
                         featc.astype(jnp.bfloat16),
                         lp["wc"], lp["wu"])
    return out.reshape(B, N, -1)


def molnet_forward(params, cfg, x, env, idx_base):
    # x: [B, in_dim, N] (PyTorch layout) -> channel-last
    x_cl = jnp.transpose(x, (0, 2, 1))
    xs = []
    for i, lp in enumerate(params["molconv"]):
        inp = x_cl if i == 0 else xs[-1]
        xs.append(molconv_layer(inp, idx_base, lp, cfg["k"], remove_xyz=(i == 0)))
    xcat = jnp.concatenate(xs, axis=-1)                      # [B, N, emb_dim]
    if cfg["add_num"] == 1:
        env2d = env[:, None]
    elif cfg["add_num"] > 1:
        env2d = env
    else:
        env2d = None
    return head_decoder_pallas(xcat, env2d, params, cfg)


# ----------------------------------------------------------------------------
# Deterministic synthetic parameter init (matches module shapes) + host-side
# folding of BN scales / dist_ff scalar / resize matrices / bf16 casts.
# ----------------------------------------------------------------------------
def _kaiming(key, shape, fan_in, a=0.2):
    std = math.sqrt(2.0 / (1.0 + a * a)) / math.sqrt(fan_in)
    return std * jax.random.normal(key, shape, dtype=jnp.float32)


def init_params(key, cfg):
    keys = iter(jax.random.split(key, 64))
    k = cfg["k"]
    params = {"molconv": []}
    in_dims = [cfg["in_dim"]] + cfg["encode_layers"][:-1]
    for i, (din, dout) in enumerate(zip(in_dims, cfg["encode_layers"])):
        dp = din - 3 if i == 0 else din          # remove_xyz on the first layer
        c1 = dp + k
        params["molconv"].append({
            "wc": _kaiming(next(keys), (dp, c1), fan_in=dp),     # center_ff conv.T
            "wd": _kaiming(next(keys), (1,), fan_in=1),          # dist_ff conv (scalar)
            "wu": _kaiming(next(keys), (c1, dout), fan_in=c1),   # update_ff conv.T
        })
    E = cfg["emb_dim"]
    params["wconv"] = _kaiming(next(keys), (E, E), fan_in=E)     # encoder Conv1d.T
    # nn.Linear weights are re-initialised to N(0,1) with zero bias in MolNet_Oth
    params["wm"] = jax.random.normal(next(keys), (2 * E, E), dtype=jnp.float32)
    params["bm"] = jnp.zeros((1, E), jnp.float32)
    dec_in = [E + cfg["add_num"]] + cfg["decode_layers"][:-1]
    params["dec"] = []
    for din, dout in zip(dec_in, cfg["decode_layers"]):
        params["dec"].append({
            "w1": jax.random.normal(next(keys), (din, dout), dtype=jnp.float32),
            "w2": jax.random.normal(next(keys), (dout, dout), dtype=jnp.float32),
            "w3": jax.random.normal(next(keys), (dout, dout), dtype=jnp.float32),
        })
    params["wfc"] = jax.random.normal(next(keys), (cfg["decode_layers"][-1], 1),
                                      dtype=jnp.float32)
    params["bfc"] = jnp.zeros((1,), jnp.float32)
    return params


def fold_params(params):
    """Fold eval-mode BN scales / dist_ff scalar into weights, cast matmul
    operands to bf16, precompute nearest-resize one-hot matrices (once)."""
    bn = BN_SCALE
    fp = {"molconv": []}
    for lp in params["molconv"]:
        fp["molconv"].append({
            "wc": (lp["wc"] * bn).astype(jnp.bfloat16),
            "wu": (lp["wu"] * bn).astype(jnp.bfloat16),
            "wd_scale": lp["wd"][0] * bn,                      # scalar, folded into dist
        })
    fp["wconv"] = (params["wconv"] * bn).astype(jnp.bfloat16)
    fp["wm"] = params["wm"] * bn
    fp["bm"] = params["bm"] * bn
    fp["dec"] = []
    for bp in params["dec"]:
        din, dout = bp["w1"].shape
        idx = (jnp.arange(dout) * din) // dout                 # nearest-neighbor resize
        s = jnp.zeros((din, dout), jnp.float32).at[idx, jnp.arange(dout)].set(1.0)
        fp["dec"].append({"w1": bp["w1"], "w2": bp["w2"], "w3": bp["w3"], "s": s})
    fp["wfc"] = params["wfc"]
    fp["bfc"] = params["bfc"].reshape(1, 1)
    return fp


if __name__ == "__main__":
    B, D, N, K = 2, 14, 16, 4
    cfg = dict(in_dim=D, k=K, encode_layers=[16, 16], emb_dim=32,
               add_num=1, decode_layers=[32, 16], dropout=0.0)
    key = jax.random.PRNGKey(0)
    kp, kx, ke = jax.random.split(key, 3)
    params = fold_params(init_params(kp, cfg))
    x = jax.random.normal(kx, (B, D, N), dtype=jnp.float32)     # [B, 14, atom_num]
    env = jax.random.normal(ke, (B,), dtype=jnp.float32)        # add_num == 1
    idx_base = (jnp.arange(B, dtype=jnp.int32) * N).reshape(B, 1, 1)

    fwd = jax.jit(lambda p, xx, ee, ib: molnet_forward(p, cfg, xx, ee, ib))
    out = jax.block_until_ready(fwd(params, x, env, idx_base))
    assert out.shape == (B, 1) and bool(jnp.isfinite(out).all())
    print("KERNEL_OK")
</pallas_src>

<mosaic_0001>
module attributes {stable_mosaic.version = 11 : i64} {
  func.func @_molconv_kernel(%arg0: i32, %arg1: memref<4x32x16xbf16, #tpu.memory_space<vmem>>, %arg2: memref<32x11xbf16, #tpu.memory_space<vmem>>, %arg3: memref<11x15xbf16, #tpu.memory_space<vmem>>, %arg4: memref<15x16xbf16, #tpu.memory_space<vmem>>, %arg5: memref<32x16xf32, #tpu.memory_space<vmem>>) attributes {dimension_semantics = [#tpu.dimension_semantics<parallel>], iteration_bounds = array<i64: 1>, scalar_prefetch = 0 : i64, scratch_operands = 0 : i64, tpu.core_type = #tpu.core_type<tc>, window_params = [{transform_indices = @transform_0, window_bounds = array<i64: 4, 32, 16>}, {transform_indices = @transform_1, window_bounds = array<i64: 32, 11>}, {pipeline_mode = #tpu.pipeline_mode<synchronous>, transform_indices = @transform_2, window_bounds = array<i64: 11, 15>}, {pipeline_mode = #tpu.pipeline_mode<synchronous>, transform_indices = @transform_3, window_bounds = array<i64: 15, 16>}, {transform_indices = @transform_4, window_bounds = array<i64: 32, 16>}]} {
    %c0 = arith.constant 0 : index
    %c0_0 = arith.constant 0 : index
    %c0_1 = arith.constant 0 : index
    %0 = vector.load %arg1[%c0, %c0_0, %c0_1] : memref<4x32x16xbf16, #tpu.memory_space<vmem>>, vector<4x32x16xbf16>
    %1 = arith.extf %0 : vector<4x32x16xbf16> to vector<4x32x16xf32>
    %2 = vector.extract_strided_slice %1 {offsets = [0, 0, 15], sizes = [4, 32, 1], strides = [1, 1, 1]} : vector<4x32x16xf32> to vector<4x32x1xf32>
    %3 = arith.negf %2 : vector<4x32x1xf32>
    %4 = math.exp %3 : vector<4x32x1xf32>
    %cst = arith.constant 1.000000e+00 : f32
    %5 = vector.broadcast %cst : f32 to vector<4x32x1xf32>
    %6 = arith.addf %5, %4 : vector<4x32x1xf32>
    %7 = arith.divf %5, %6 : vector<4x32x1xf32>
    %c0_2 = arith.constant 0 : index
    %c0_3 = arith.constant 0 : index
    %8 = vector.load %arg2[%c0_2, %c0_3] : memref<32x11xbf16, #tpu.memory_space<vmem>>, vector<32x11xbf16>
    %c0_4 = arith.constant 0 : index
    %c0_5 = arith.constant 0 : index
    %9 = vector.load %arg3[%c0_4, %c0_5] : memref<11x15xbf16, #tpu.memory_space<vmem>>, vector<11x15xbf16>
    %cst_6 = arith.constant dense<0.000000e+00> : vector<32x15xf32>
    %10 = tpu.matmul %8, %9, %cst_6 {dimension_numbers = #tpu.dot_dimension_numbers<[1], [0], [0], [1], [0, 0, 1, 1], [], []>} : vector<32x11xbf16>, vector<11x15xbf16>, vector<32x15xf32> -> vector<32x15xf32>
    %11 = arith.negf %10 : vector<32x15xf32>
    %12 = math.exp %11 : vector<32x15xf32>
    %cst_7 = arith.constant 1.000000e+00 : f32
    %13 = vector.broadcast %cst_7 : f32 to vector<32x15xf32>
    %14 = arith.addf %13, %12 : vector<32x15xf32>
    %15 = arith.divf %13, %14 : vector<32x15xf32>
    %16 = vector.extract_strided_slice %1 {offsets = [0, 0, 0], sizes = [4, 32, 15], strides = [1, 1, 1]} : vector<4x32x16xf32> to vector<4x32x15xf32>
    %17 = vector.broadcast %7 : vector<4x32x1xf32> to vector<4x32x15xf32>
    %18 = arith.mulf %17, %16 : vector<4x32x15xf32>
    %19 = vector.shape_cast %15 : vector<32x15xf32> to vector<1x32x15xf32>
    %20 = vector.broadcast %19 : vector<1x32x15xf32> to vector<4x32x15xf32>
    %21 = arith.addf %18, %20 : vector<4x32x15xf32>
    %22 = vector.shape_cast %21 : vector<4x32x15xf32> to vector<128x15xf32>
    %23 = arith.truncf %22 : vector<128x15xf32> to vector<128x15xbf16>
    %c0_8 = arith.constant 0 : index
    %c0_9 = arith.constant 0 : index
    %24 = vector.load %arg4[%c0_8, %c0_9] : memref<15x16xbf16, #tpu.memory_space<vmem>>, vector<15x16xbf16>
    %cst_10 = arith.constant dense<0.000000e+00> : vector<128x16xf32>
    %25 = tpu.matmul %23, %24, %cst_10 {dimension_numbers = #tpu.dot_dimension_numbers<[1], [0], [0], [1], [0, 0, 1, 1], [], []>} : vector<128x15xbf16>, vector<15x16xbf16>, vector<128x16xf32> -> vector<128x16xf32>
    %cst_11 = arith.constant 0.000000e+00 : f32
    %26 = vector.broadcast %cst_11 : f32 to vector<128x16xf32>
    %27 = arith.cmpf oge, %25, %26 : vector<128x16xf32>
    %cst_12 = arith.constant 2.000000e-02 : f32
    %28 = vector.broadcast %cst_12 : f32 to vector<128x16xf32>
    %29 = arith.mulf %28, %25 : vector<128x16xf32>
    %30 = arith.select %27, %25, %29 : vector<128x16xi1>, vector<128x16xf32>
    %31 = vector.shape_cast %30 : vector<128x16xf32> to vector<4x32x16xf32>
    %cst_13 = arith.constant dense<0.000000e+00> : vector<32x16xf32>
    %32 = vector.multi_reduction <add>, %31, %cst_13 [0] : vector<4x32x16xf32> to vector<32x16xf32>
    %cst_14 = arith.constant 2.500000e-01 : f32
    %33 = vector.broadcast %cst_14 : f32 to vector<32x16xf32>
    %34 = arith.mulf %32, %33 : vector<32x16xf32>
    %c0_15 = arith.constant 0 : index
    %c0_16 = arith.constant 0 : index
    %35 = vector.load %arg5[%c0_15, %c0_16] : memref<32x16xf32, #tpu.memory_space<vmem>>, vector<32x16xf32>
    tpu.vector_store %arg5[%c0_15, %c0_16], %34 {strides = array<i32>} : memref<32x16xf32, #tpu.memory_space<vmem>>, vector<32x16xf32>,
    return
  }
  func.func @transform_0(%arg0: i32) -> (i32, i32, i32) {
    %c0_i32 = arith.constant 0 : i32
    %c0_i32_0 = arith.constant 0 : i32
    %c0_i32_1 = arith.constant 0 : i32
    return %c0_i32, %arg0, %c0_i32_0 : i32, i32, i32
  }
  func.func @transform_1(%arg0: i32) -> (i32, i32) {
    %c0_i32 = arith.constant 0 : i32
    %c0_i32_0 = arith.constant 0 : i32
    return %arg0, %c0_i32 : i32, i32
  }
  func.func @transform_2(%arg0: i32) -> (i32, i32) {
    %c0_i32 = arith.constant 0 : i32
    %c0_i32_0 = arith.constant 0 : i32
    %c0_i32_1 = arith.constant 0 : i32
    return %c0_i32, %c0_i32_0 : i32, i32
  }
  func.func @transform_3(%arg0: i32) -> (i32, i32) {
    %c0_i32 = arith.constant 0 : i32
    %c0_i32_0 = arith.constant 0 : i32
    %c0_i32_1 = arith.constant 0 : i32
    return %c0_i32, %c0_i32_0 : i32, i32
  }
  func.func @transform_4(%arg0: i32) -> (i32, i32) {
    %c0_i32 = arith.constant 0 : i32
    %c0_i32_0 = arith.constant 0 : i32
    return %arg0, %c0_i32 : i32, i32
  }
}

module attributes {stable_mosaic.version = 11 : i64} {
  func.func @_molconv_kernel(%arg0: i32, %arg1: memref<4x32x21xbf16, #tpu.memory_space<vmem>>, %arg2: memref<32x16xbf16, #tpu.memory_space<vmem>>, %arg3: memref<16x20xbf16, #tpu.memory_space<vmem>>, %arg4: memref<20x16xbf16, #tpu.memory_space<vmem>>, %arg5: memref<32x16xf32, #tpu.memory_space<vmem>>) attributes {dimension_semantics = [#tpu.dimension_semantics<parallel>], iteration_bounds = array<i64: 1>, scalar_prefetch = 0 : i64, scratch_operands = 0 : i64, tpu.core_type = #tpu.core_type<tc>, window_params = [{transform_indices = @transform_0, window_bounds = array<i64: 4, 32, 21>}, {transform_indices = @transform_1, window_bounds = array<i64: 32, 16>}, {pipeline_mode = #tpu.pipeline_mode<synchronous>, transform_indices = @transform_2, window_bounds = array<i64: 16, 20>}, {pipeline_mode = #tpu.pipeline_mode<synchronous>, transform_indices = @transform_3, window_bounds = array<i64: 20, 16>}, {transform_indices = @transform_4, window_bounds = array<i64: 32, 16>}]} {
    %c0 = arith.constant 0 : index
    %c0_0 = arith.constant 0 : index
    %c0_1 = arith.constant 0 : index
    %0 = vector.load %arg1[%c0, %c0_0, %c0_1] : memref<4x32x21xbf16, #tpu.memory_space<vmem>>, vector<4x32x21xbf16>
    %1 = arith.extf %0 : vector<4x32x21xbf16> to vector<4x32x21xf32>
    %2 = vector.extract_strided_slice %1 {offsets = [0, 0, 20], sizes = [4, 32, 1], strides = [1, 1, 1]} : vector<4x32x21xf32> to vector<4x32x1xf32>
    %3 = arith.negf %2 : vector<4x32x1xf32>
    %4 = math.exp %3 : vector<4x32x1xf32>
    %cst = arith.constant 1.000000e+00 : f32
    %5 = vector.broadcast %cst : f32 to vector<4x32x1xf32>
    %6 = arith.addf %5, %4 : vector<4x32x1xf32>
    %7 = arith.divf %5, %6 : vector<4x32x1xf32>
    %c0_2 = arith.constant 0 : index
    %c0_3 = arith.constant 0 : index
    %8 = vector.load %arg2[%c0_2, %c0_3] : memref<32x16xbf16, #tpu.memory_space<vmem>>, vector<32x16xbf16>
    %c0_4 = arith.constant 0 : index
    %c0_5 = arith.constant 0 : index
    %9 = vector.load %arg3[%c0_4, %c0_5] : memref<16x20xbf16, #tpu.memory_space<vmem>>, vector<16x20xbf16>
    %cst_6 = arith.constant dense<0.000000e+00> : vector<32x20xf32>
    %10 = tpu.matmul %8, %9, %cst_6 {dimension_numbers = #tpu.dot_dimension_numbers<[1], [0], [0], [1], [0, 0, 1, 1], [], []>} : vector<32x16xbf16>, vector<16x20xbf16>, vector<32x20xf32> -> vector<32x20xf32>
    %11 = arith.negf %10 : vector<32x20xf32>
    %12 = math.exp %11 : vector<32x20xf32>
    %cst_7 = arith.constant 1.000000e+00 : f32
    %13 = vector.broadcast %cst_7 : f32 to vector<32x20xf32>
    %14 = arith.addf %13, %12 : vector<32x20xf32>
    %15 = arith.divf %13, %14 : vector<32x20xf32>
    %16 = vector.extract_strided_slice %1 {offsets = [0, 0, 0], sizes = [4, 32, 20], strides = [1, 1, 1]} : vector<4x32x21xf32> to vector<4x32x20xf32>
    %17 = vector.broadcast %7 : vector<4x32x1xf32> to vector<4x32x20xf32>
    %18 = arith.mulf %17, %16 : vector<4x32x20xf32>
    %19 = vector.shape_cast %15 : vector<32x20xf32> to vector<1x32x20xf32>
    %20 = vector.broadcast %19 : vector<1x32x20xf32> to vector<4x32x20xf32>
    %21 = arith.addf %18, %20 : vector<4x32x20xf32>
    %22 = vector.shape_cast %21 : vector<4x32x20xf32> to vector<128x20xf32>
    %23 = arith.truncf %22 : vector<128x20xf32> to vector<128x20xbf16>
    %c0_8 = arith.constant 0 : index
    %c0_9 = arith.constant 0 : index
    %24 = vector.load %arg4[%c0_8, %c0_9] : memref<20x16xbf16, #tpu.memory_space<vmem>>, vector<20x16xbf16>
    %cst_10 = arith.constant dense<0.000000e+00> : vector<128x16xf32>
    %25 = tpu.matmul %23, %24, %cst_10 {dimension_numbers = #tpu.dot_dimension_numbers<[1], [0], [0], [1], [0, 0, 1, 1], [], []>} : vector<128x20xbf16>, vector<20x16xbf16>, vector<128x16xf32> -> vector<128x16xf32>
    %cst_11 = arith.constant 0.000000e+00 : f32
    %26 = vector.broadcast %cst_11 : f32 to vector<128x16xf32>
    %27 = arith.cmpf oge, %25, %26 : vector<128x16xf32>
    %cst_12 = arith.constant 2.000000e-02 : f32
    %28 = vector.broadcast %cst_12 : f32 to vector<128x16xf32>
    %29 = arith.mulf %28, %25 : vector<128x16xf32>
    %30 = arith.select %27, %25, %29 : vector<128x16xi1>, vector<128x16xf32>
    %31 = vector.shape_cast %30 : vector<128x16xf32> to vector<4x32x16xf32>
    %cst_13 = arith.constant dense<0.000000e+00> : vector<32x16xf32>
    %32 = vector.multi_reduction <add>, %31, %cst_13 [0] : vector<4x32x16xf32> to vector<32x16xf32>
    %cst_14 = arith.constant 2.500000e-01 : f32
    %33 = vector.broadcast %cst_14 : f32 to vector<32x16xf32>
    %34 = arith.mulf %32, %33 : vector<32x16xf32>
    %c0_15 = arith.constant 0 : index
    %c0_16 = arith.constant 0 : index
    %35 = vector.load %arg5[%c0_15, %c0_16] : memref<32x16xf32, #tpu.memory_space<vmem>>, vector<32x16xf32>
    tpu.vector_store %arg5[%c0_15, %c0_16], %34 {strides = array<i32>} : memref<32x16xf32, #tpu.memory_space<vmem>>, vector<32x16xf32>,
    return
  }
  func.func @transform_0(%arg0: i32) -> (i32, i32, i32) {
    %c0_i32 = arith.constant 0 : i32
    %c0_i32_0 = arith.constant 0 : i32
    %c0_i32_1 = arith.constant 0 : i32
    return %c0_i32, %arg0, %c0_i32_0 : i32, i32, i32
  }
  func.func @transform_1(%arg0: i32) -> (i32, i32) {
    %c0_i32 = arith.constant 0 : i32
    %c0_i32_0 = arith.constant 0 : i32
    return %arg0, %c0_i32 : i32, i32
  }
  func.func @transform_2(%arg0: i32) -> (i32, i32) {
    %c0_i32 = arith.constant 0 : i32
    %c0_i32_0 = arith.constant 0 : i32
    %c0_i32_1 = arith.constant 0 : i32
    return %c0_i32, %c0_i32_0 : i32, i32
  }
  func.func @transform_3(%arg0: i32) -> (i32, i32) {
    %c0_i32 = arith.constant 0 : i32
    %c0_i32_0 = arith.constant 0 : i32
    %c0_i32_1 = arith.constant 0 : i32
    return %c0_i32, %c0_i32_0 : i32, i32
  }
  func.func @transform_4(%arg0: i32) -> (i32, i32) {
    %c0_i32 = arith.constant 0 : i32
    %c0_i32_0 = arith.constant 0 : i32
    return %arg0, %c0_i32 : i32, i32
  }
}

module attributes {stable_mosaic.version = 11 : i64} {
  func.func @kernel(%arg0: i32, %arg1: memref<2x16x32xbf16, #tpu.memory_space<vmem>>, %arg2: memref<2x1xf32, #tpu.memory_space<vmem>>, %arg3: memref<32x32xbf16, #tpu.memory_space<vmem>>, %arg4: memref<64x32xf32, #tpu.memory_space<vmem>>, %arg5: memref<1x32xf32, #tpu.memory_space<vmem>>, %arg6: memref<33x32xf32, #tpu.memory_space<vmem>>, %arg7: memref<32x32xf32, #tpu.memory_space<vmem>>, %arg8: memref<32x32xf32, #tpu.memory_space<vmem>>, %arg9: memref<33x32xf32, #tpu.memory_space<vmem>>, %arg10: memref<32x16xf32, #tpu.memory_space<vmem>>, %arg11: memref<16x16xf32, #tpu.memory_space<vmem>>, %arg12: memref<16x16xf32, #tpu.memory_space<vmem>>, %arg13: memref<32x16xf32, #tpu.memory_space<vmem>>, %arg14: memref<16x1xf32, #tpu.memory_space<vmem>>, %arg15: memref<1x1xf32, #tpu.memory_space<vmem>>, %arg16: memref<2x1xf32, #tpu.memory_space<vmem>>) attributes {dimension_semantics = [#tpu.dimension_semantics<parallel>], iteration_bounds = array<i64: 1>, scalar_prefetch = 0 : i64, scratch_operands = 0 : i64, tpu.core_type = #tpu.core_type<tc>, window_params = [{transform_indices = @transform_0, window_bounds = array<i64: 2, 16, 32>}, {transform_indices = @transform_1, window_bounds = array<i64: 2, 1>}, {pipeline_mode = #tpu.pipeline_mode<synchronous>, transform_indices = @transform_2, window_bounds = array<i64: 32, 32>}, {pipeline_mode = #tpu.pipeline_mode<synchronous>, transform_indices = @transform_3, window_bounds = array<i64: 64, 32>}, {pipeline_mode = #tpu.pipeline_mode<synchronous>, transform_indices = @transform_4, window_bounds = array<i64: 1, 32>}, {pipeline_mode = #tpu.pipeline_mode<synchronous>, transform_indices = @transform_5, window_bounds = array<i64: 33, 32>}, {pipeline_mode = #tpu.pipeline_mode<synchronous>, transform_indices = @transform_6, window_bounds = array<i64: 32, 32>}, {pipeline_mode = #tpu.pipeline_mode<synchronous>, transform_indices = @transform_7, window_bounds = array<i64: 32, 32>}, {pipeline_mode = #tpu.pipeline_mode<synchronous>, transform_indices = @transform_8, window_bounds = array<i64: 33, 32>}, {pipeline_mode = #tpu.pipeline_mode<synchronous>, transform_indices = @transform_9, window_bounds = array<i64: 32, 16>}, {pipeline_mode = #tpu.pipeline_mode<synchronous>, transform_indices = @transform_10, window_bounds = array<i64: 16, 16>}, {pipeline_mode = #tpu.pipeline_mode<synchronous>, transform_indices = @transform_11, window_bounds = array<i64: 16, 16>}, {pipeline_mode = #tpu.pipeline_mode<synchronous>, transform_indices = @transform_12, window_bounds = array<i64: 32, 16>}, {pipeline_mode = #tpu.pipeline_mode<synchronous>, transform_indices = @transform_13, window_bounds = array<i64: 16, 1>}, {pipeline_mode = #tpu.pipeline_mode<synchronous>, transform_indices = @transform_14, window_bounds = array<i64: 1, 1>}, {transform_indices = @transform_15, window_bounds = array<i64: 2, 1>}]} {
    %c0 = arith.constant 0 : index
    %c0_0 = arith.constant 0 : index
    %c0_1 = arith.constant 0 : index
    %0 = vector.load %arg1[%c0, %c0_0, %c0_1] : memref<2x16x32xbf16, #tpu.memory_space<vmem>>, vector<2x16x32xbf16>
    %1 = vector.shape_cast %0 : vector<2x16x32xbf16> to vector<32x32xbf16>
    %c0_2 = arith.constant 0 : index
    %c0_3 = arith.constant 0 : index
    %2 = vector.load %arg3[%c0_2, %c0_3] : memref<32x32xbf16, #tpu.memory_space<vmem>>, vector<32x32xbf16>
    %cst = arith.constant dense<0.000000e+00> : vector<32x32xf32>
    %3 = tpu.matmul %1, %2, %cst {dimension_numbers = #tpu.dot_dimension_numbers<[1], [0], [0], [1], [0, 0, 1, 1], [], []>} : vector<32x32xbf16>, vector<32x32xbf16>, vector<32x32xf32> -> vector<32x32xf32>
    %cst_4 = arith.constant 0.000000e+00 : f32
    %4 = vector.broadcast %cst_4 : f32 to vector<32x32xf32>
    %5 = arith.cmpf oge, %3, %4 : vector<32x32xf32>
    %cst_5 = arith.constant 2.000000e-01 : f32
    %6 = vector.broadcast %cst_5 : f32 to vector<32x32xf32>
    %7 = arith.mulf %6, %3 : vector<32x32xf32>
    %8 = arith.select %5, %3, %7 : vector<32x32xi1>, vector<32x32xf32>
    %9 = vector.shape_cast %8 : vector<32x32xf32> to vector<2x16x32xf32>
    %cst_6 = arith.constant dense<0xFF800000> : vector<2x32xf32>
    %10 = vector.multi_reduction <maximumf>, %9, %cst_6 [1] : vector<2x16x32xf32> to vector<2x32xf32>
    %cst_7 = arith.constant dense<0.000000e+00> : vector<2x32xf32>
    %11 = vector.multi_reduction <add>, %9, %cst_7 [1] : vector<2x16x32xf32> to vector<2x32xf32>
    %cst_8 = arith.constant 1.600000e+01 : f32
    %12 = vector.broadcast %cst_8 : f32 to vector<2x32xf32>
    %13 = arith.divf %11, %12 : vector<2x32xf32>
    %14 = tpu.concatenate %10, %13 in 1 : vector<2x32xf32>, vector<2x32xf32> -> vector<2x64xf32>
    %c0_9 = arith.constant 0 : index
    %c0_10 = arith.constant 0 : index
    %15 = vector.load %arg4[%c0_9, %c0_10] : memref<64x32xf32, #tpu.memory_space<vmem>>, vector<64x32xf32>
    %cst_11 = arith.constant dense<0.000000e+00> : vector<2x32xf32>
    %16 = tpu.matmul %14, %15, %cst_11 {dimension_numbers = #tpu.dot_dimension_numbers<[1], [0], [0], [1], [0, 0, 1, 1], [], []>} : vector<2x64xf32>, vector<64x32xf32>, vector<2x32xf32> -> vector<2x32xf32>
    %c0_12 = arith.constant 0 : index
    %c0_13 = arith.constant 0 : index
    %17 = vector.load %arg5[%c0_12, %c0_13] : memref<1x32xf32, #tpu.memory_space<vmem>>, vector<1x32xf32>
    %18 = vector.broadcast %17 : vector<1x32xf32> to vector<2x32xf32>
    %19 = arith.addf %16, %18 : vector<2x32xf32>
    %cst_14 = arith.constant 0.000000e+00 : f32
    %20 = vector.broadcast %cst_14 : f32 to vector<2x32xf32>
    %21 = arith.cmpf oge, %19, %20 : vector<2x32xf32>
    %cst_15 = arith.constant 2.000000e-01 : f32
    %22 = vector.broadcast %cst_15 : f32 to vector<2x32xf32>
    %23 = arith.mulf %22, %19 : vector<2x32xf32>
    %24 = arith.select %21, %19, %23 : vector<2x32xi1>, vector<2x32xf32>
    %c0_16 = arith.constant 0 : index
    %c0_17 = arith.constant 0 : index
    %25 = vector.load %arg2[%c0_16, %c0_17] : memref<2x1xf32, #tpu.memory_space<vmem>>, vector<2x1xf32>
    %26 = tpu.concatenate %24, %25 in 1 : vector<2x32xf32>, vector<2x1xf32> -> vector<2x33xf32>
    %c0_18 = arith.constant 0 : index
    %c0_19 = arith.constant 0 : index
    %27 = vector.load %arg9[%c0_18, %c0_19] : memref<33x32xf32, #tpu.memory_space<vmem>>, vector<33x32xf32>
    %cst_20 = arith.constant dense<0.000000e+00> : vector<2x32xf32>
    %28 = tpu.matmul %26, %27, %cst_20 {dimension_numbers = #tpu.dot_dimension_numbers<[1], [0], [0], [1], [0, 0, 1, 1], [], []>} : vector<2x33xf32>, vector<33x32xf32>, vector<2x32xf32> -> vector<2x32xf32>
    %c0_21 = arith.constant 0 : index
    %c0_22 = arith.constant 0 : index
    %29 = vector.load %arg6[%c0_21, %c0_22] : memref<33x32xf32, #tpu.memory_space<vmem>>, vector<33x32xf32>
    %cst_23 = arith.constant dense<0.000000e+00> : vector<2x32xf32>
    %30 = tpu.matmul %26, %29, %cst_23 {dimension_numbers = #tpu.dot_dimension_numbers<[1], [0], [0], [1], [0, 0, 1, 1], [], []>} : vector<2x33xf32>, vector<33x32xf32>, vector<2x32xf32> -> vector<2x32xf32>
    %cst_24 = arith.constant dense<0.000000e+00> : vector<2xf32>
    %31 = vector.multi_reduction <add>, %30, %cst_24 [1] : vector<2x32xf32> to vector<2xf32>
    %32 = vector.shape_cast %31 : vector<2xf32> to vector<2x1xf32>
    %cst_25 = arith.constant 3.200000e+01 : f32
    %33 = vector.broadcast %cst_25 : f32 to vector<2x1xf32>
    %34 = arith.divf %32, %33 : vector<2x1xf32>
    %35 = vector.broadcast %34 : vector<2x1xf32> to vector<2x32xf32>
    %36 = arith.subf %30, %35 : vector<2x32xf32>
    %37 = arith.mulf %36, %36 : vector<2x32xf32>
    %cst_26 = arith.constant dense<0.000000e+00> : vector<2xf32>
    %38 = vector.multi_reduction <add>, %37, %cst_26 [1] : vector<2x32xf32> to vector<2xf32>
    %39 = vector.shape_cast %38 : vector<2xf32> to vector<2x1xf32>
    %cst_27 = arith.constant 3.200000e+01 : f32
    %40 = vector.broadcast %cst_27 : f32 to vector<2x1xf32>
    %41 = arith.divf %39, %40 : vector<2x1xf32>
    %42 = vector.broadcast %34 : vector<2x1xf32> to vector<2x32xf32>
    %43 = arith.subf %30, %42 : vector<2x32xf32>
    %cst_28 = arith.constant 9.99999974E-6 : f32
    %44 = vector.broadcast %cst_28 : f32 to vector<2x1xf32>
    %45 = arith.addf %41, %44 : vector<2x1xf32>
    %46 = math.rsqrt %45 : vector<2x1xf32>
    %47 = vector.broadcast %46 : vector<2x1xf32> to vector<2x32xf32>
    %48 = arith.mulf %43, %47 : vector<2x32xf32>
    %cst_29 = arith.constant 0.000000e+00 : f32
    %49 = vector.broadcast %cst_29 : f32 to vector<2x32xf32>
    %50 = arith.cmpf oge, %48, %49 : vector<2x32xf32>
    %cst_30 = arith.constant 2.000000e-01 : f32
    %51 = vector.broadcast %cst_30 : f32 to vector<2x32xf32>
    %52 = arith.mulf %51, %48 : vector<2x32xf32>
    %53 = arith.select %50, %48, %52 : vector<2x32xi1>, vector<2x32xf32>
    %c0_31 = arith.constant 0 : index
    %c0_32 = arith.constant 0 : index
    %54 = vector.load %arg7[%c0_31, %c0_32] : memref<32x32xf32, #tpu.memory_space<vmem>>, vector<32x32xf32>
    %cst_33 = arith.constant dense<0.000000e+00> : vector<2x32xf32>
    %55 = tpu.matmul %53, %54, %cst_33 {dimension_numbers = #tpu.dot_dimension_numbers<[1], [0], [0], [1], [0, 0, 1, 1], [], []>} : vector<2x32xf32>, vector<32x32xf32>, vector<2x32xf32> -> vector<2x32xf32>
    %cst_34 = arith.constant dense<0.000000e+00> : vector<2xf32>
    %56 = vector.multi_reduction <add>, %55, %cst_34 [1] : vector<2x32xf32> to vector<2xf32>
    %57 = vector.shape_cast %56 : vector<2xf32> to vector<2x1xf32>
    %cst_35 = arith.constant 3.200000e+01 : f32
    %58 = vector.broadcast %cst_35 : f32 to vector<2x1xf32>
    %59 = arith.divf %57, %58 : vector<2x1xf32>
    %60 = vector.broadcast %59 : vector<2x1xf32> to vector<2x32xf32>
    %61 = arith.subf %55, %60 : vector<2x32xf32>
    %62 = arith.mulf %61, %61 : vector<2x32xf32>
    %cst_36 = arith.constant dense<0.000000e+00> : vector<2xf32>
    %63 = vector.multi_reduction <add>, %62, %cst_36 [1] : vector<2x32xf32> to vector<2xf32>
    %64 = vector.shape_cast %63 : vector<2xf32> to vector<2x1xf32>
    %cst_37 = arith.constant 3.200000e+01 : f32
    %65 = vector.broadcast %cst_37 : f32 to vector<2x1xf32>
    %66 = arith.divf %64, %65 : vector<2x1xf32>
    %67 = vector.broadcast %59 : vector<2x1xf32> to vector<2x32xf32>
    %68 = arith.subf %55, %67 : vector<2x32xf32>
    %cst_38 = arith.constant 9.99999974E-6 : f32
    %69 = vector.broadcast %cst_38 : f32 to vector<2x1xf32>
    %70 = arith.addf %66, %69 : vector<2x1xf32>
    %71 = math.rsqrt %70 : vector<2x1xf32>
    %72 = vector.broadcast %71 : vector<2x1xf32> to vector<2x32xf32>
    %73 = arith.mulf %68, %72 : vector<2x32xf32>
    %cst_39 = arith.constant 0.000000e+00 : f32
    %74 = vector.broadcast %cst_39 : f32 to vector<2x32xf32>
    %75 = arith.cmpf oge, %73, %74 : vector<2x32xf32>
    %cst_40 = arith.constant 2.000000e-01 : f32
    %76 = vector.broadcast %cst_40 : f32 to vector<2x32xf32>
    %77 = arith.mulf %76, %73 : vector<2x32xf32>
    %78 = arith.select %75, %73, %77 : vector<2x32xi1>, vector<2x32xf32>
    %c0_41 = arith.constant 0 : index
    %c0_42 = arith.constant 0 : index
    %79 = vector.load %arg8[%c0_41, %c0_42] : memref<32x32xf32, #tpu.memory_space<vmem>>, vector<32x32xf32>
    %cst_43 = arith.constant dense<0.000000e+00> : vector<2x32xf32>
    %80 = tpu.matmul %78, %79, %cst_43 {dimension_numbers = #tpu.dot_dimension_numbers<[1], [0], [0], [1], [0, 0, 1, 1], [], []>} : vector<2x32xf32>, vector<32x32xf32>, vector<2x32xf32> -> vector<2x32xf32>
    %cst_44 = arith.constant dense<0.000000e+00> : vector<2xf32>
    %81 = vector.multi_reduction <add>, %80, %cst_44 [1] : vector<2x32xf32> to vector<2xf32>
    %82 = vector.shape_cast %81 : vector<2xf32> to vector<2x1xf32>
    %cst_45 = arith.constant 3.200000e+01 : f32
    %83 = vector.broadcast %cst_45 : f32 to vector<2x1xf32>
    %84 = arith.divf %82, %83 : vector<2x1xf32>
    %85 = vector.broadcast %84 : vector<2x1xf32> to vector<2x32xf32>
    %86 = arith.subf %80, %85 : vector<2x32xf32>
    %87 = arith.mulf %86, %86 : vector<2x32xf32>
    %cst_46 = arith.constant dense<0.000000e+00> : vector<2xf32>
    %88 = vector.multi_reduction <add>, %87, %cst_46 [1] : vector<2x32xf32> to vector<2xf32>
    %89 = vector.shape_cast %88 : vector<2xf32> to vector<2x1xf32>
    %cst_47 = arith.constant 3.200000e+01 : f32
    %90 = vector.broadcast %cst_47 : f32 to vector<2x1xf32>
    %91 = arith.divf %89, %90 : vector<2x1xf32>
    %92 = vector.broadcast %84 : vector<2x1xf32> to vector<2x32xf32>
    %93 = arith.subf %80, %92 : vector<2x32xf32>
    %cst_48 = arith.constant 9.99999974E-6 : f32
    %94 = vector.broadcast %cst_48 : f32 to vector<2x1xf32>
    %95 = arith.addf %91, %94 : vector<2x1xf32>
    %96 = math.rsqrt %95 : vector<2x1xf32>
    %97 = vector.broadcast %96 : vector<2x1xf32> to vector<2x32xf32>
    %98 = arith.mulf %93, %97 : vector<2x32xf32>
    %99 = arith.addf %98, %28 : vector<2x32xf32>
    %cst_49 = arith.constant 0.000000e+00 : f32
    %100 = vector.broadcast %cst_49 : f32 to vector<2x32xf32>
    %101 = arith.cmpf oge, %99, %100 : vector<2x32xf32>
    %cst_50 = arith.constant 2.000000e-01 : f32
    %102 = vector.broadcast %cst_50 : f32 to vector<2x32xf32>
    %103 = arith.mulf %102, %99 : vector<2x32xf32>
    %104 = arith.select %101, %99, %103 : vector<2x32xi1>, vector<2x32xf32>
    %c0_51 = arith.constant 0 : index
    %c0_52 = arith.constant 0 : index
    %105 = vector.load %arg13[%c0_51, %c0_52] : memref<32x16xf32, #tpu.memory_space<vmem>>, vector<32x16xf32>
    %cst_53 = arith.constant dense<0.000000e+00> : vector<2x16xf32>
    %106 = tpu.matmul %104, %105, %cst_53 {dimension_numbers = #tpu.dot_dimension_numbers<[1], [0], [0], [1], [0, 0, 1, 1], [], []>} : vector<2x32xf32>, vector<32x16xf32>, vector<2x16xf32> -> vector<2x16xf32>
    %c0_54 = arith.constant 0 : index
    %c0_55 = arith.constant 0 : index
    %107 = vector.load %arg10[%c0_54, %c0_55] : memref<32x16xf32, #tpu.memory_space<vmem>>, vector<32x16xf32>
    %cst_56 = arith.constant dense<0.000000e+00> : vector<2x16xf32>
    %108 = tpu.matmul %104, %107, %cst_56 {dimension_numbers = #tpu.dot_dimension_numbers<[1], [0], [0], [1], [0, 0, 1, 1], [], []>} : vector<2x32xf32>, vector<32x16xf32>, vector<2x16xf32> -> vector<2x16xf32>
    %cst_57 = arith.constant dense<0.000000e+00> : vector<2xf32>
    %109 = vector.multi_reduction <add>, %108, %cst_57 [1] : vector<2x16xf32> to vector<2xf32>
    %110 = vector.shape_cast %109 : vector<2xf32> to vector<2x1xf32>
    %cst_58 = arith.constant 1.600000e+01 : f32
    %111 = vector.broadcast %cst_58 : f32 to vector<2x1xf32>
    %112 = arith.divf %110, %111 : vector<2x1xf32>
    %113 = vector.broadcast %112 : vector<2x1xf32> to vector<2x16xf32>
    %114 = arith.subf %108, %113 : vector<2x16xf32>
    %115 = arith.mulf %114, %114 : vector<2x16xf32>
    %cst_59 = arith.constant dense<0.000000e+00> : vector<2xf32>
    %116 = vector.multi_reduction <add>, %115, %cst_59 [1] : vector<2x16xf32> to vector<2xf32>
    %117 = vector.shape_cast %116 : vector<2xf32> to vector<2x1xf32>
    %cst_60 = arith.constant 1.600000e+01 : f32
    %118 = vector.broadcast %cst_60 : f32 to vector<2x1xf32>
    %119 = arith.divf %117, %118 : vector<2x1xf32>
    %120 = vector.broadcast %112 : vector<2x1xf32> to vector<2x16xf32>
    %121 = arith.subf %108, %120 : vector<2x16xf32>
    %cst_61 = arith.constant 9.99999974E-6 : f32
    %122 = vector.broadcast %cst_61 : f32 to vector<2x1xf32>
    %123 = arith.addf %119, %122 : vector<2x1xf32>
    %124 = math.rsqrt %123 : vector<2x1xf32>
    %125 = vector.broadcast %124 : vector<2x1xf32> to vector<2x16xf32>
    %126 = arith.mulf %121, %125 : vector<2x16xf32>
    %cst_62 = arith.constant 0.000000e+00 : f32
    %127 = vector.broadcast %cst_62 : f32 to vector<2x16xf32>
    %128 = arith.cmpf oge, %126, %127 : vector<2x16xf32>
    %cst_63 = arith.constant 2.000000e-01 : f32
    %129 = vector.broadcast %cst_63 : f32 to vector<2x16xf32>
    %130 = arith.mulf %129, %126 : vector<2x16xf32>
    %131 = arith.select %128, %126, %130 : vector<2x16xi1>, vector<2x16xf32>
    %c0_64 = arith.constant 0 : index
    %c0_65 = arith.constant 0 : index
    %132 = vector.load %arg11[%c0_64, %c0_65] : memref<16x16xf32, #tpu.memory_space<vmem>>, vector<16x16xf32>
    %cst_66 = arith.constant dense<0.000000e+00> : vector<2x16xf32>
    %133 = tpu.matmul %131, %132, %cst_66 {dimension_numbers = #tpu.dot_dimension_numbers<[1], [0], [0], [1], [0, 0, 1, 1], [], []>} : vector<2x16xf32>, vector<16x16xf32>, vector<2x16xf32> -> vector<2x16xf32>
    %cst_67 = arith.constant dense<0.000000e+00> : vector<2xf32>
    %134 = vector.multi_reduction <add>, %133, %cst_67 [1] : vector<2x16xf32> to vector<2xf32>
    %135 = vector.shape_cast %134 : vector<2xf32> to vector<2x1xf32>
    %cst_68 = arith.constant 1.600000e+01 : f32
    %136 = vector.broadcast %cst_68 : f32 to vector<2x1xf32>
    %137 = arith.divf %135, %136 : vector<2x1xf32>
    %138 = vector.broadcast %137 : vector<2x1xf32> to vector<2x16xf32>
    %139 = arith.subf %133, %138 : vector<2x16xf32>
    %140 = arith.mulf %139, %139 : vector<2x16xf32>
    %cst_69 = arith.constant dense<0.000000e+00> : vector<2xf32>
    %141 = vector.multi_reduction <add>, %140, %cst_69 [1] : vector<2x16xf32> to vector<2xf32>
    %142 = vector.shape_cast %141 : vector<2xf32> to vector<2x1xf32>
    %cst_70 = arith.constant 1.600000e+01 : f32
    %143 = vector.broadcast %cst_70 : f32 to vector<2x1xf32>
    %144 = arith.divf %142, %143 : vector<2x1xf32>
    %145 = vector.broadcast %137 : vector<2x1xf32> to vector<2x16xf32>
    %146 = arith.subf %133, %145 : vector<2x16xf32>
    %cst_71 = arith.constant 9.99999974E-6 : f32
    %147 = vector.broadcast %cst_71 : f32 to vector<2x1xf32>
    %148 = arith.addf %144, %147 : vector<2x1xf32>
    %149 = math.rsqrt %148 : vector<2x1xf32>
    %150 = vector.broadcast %149 : vector<2x1xf32> to vector<2x16xf32>
    %151 = arith.mulf %146, %150 : vector<2x16xf32>
    %cst_72 = arith.constant 0.000000e+00 : f32
    %152 = vector.broadcast %cst_72 : f32 to vector<2x16xf32>
    %153 = arith.cmpf oge, %151, %152 : vector<2x16xf32>
    %cst_73 = arith.constant 2.000000e-01 : f32
    %154 = vector.broadcast %cst_73 : f32 to vector<2x16xf32>
    %155 = arith.mulf %154, %151 : vector<2x16xf32>
    %156 = arith.select %153, %151, %155 : vector<2x16xi1>, vector<2x16xf32>
    %c0_74 = arith.constant 0 : index
    %c0_75 = arith.constant 0 : index
    %157 = vector.load %arg12[%c0_74, %c0_75] : memref<16x16xf32, #tpu.memory_space<vmem>>, vector<16x16xf32>
    %cst_76 = arith.constant dense<0.000000e+00> : vector<2x16xf32>
    %158 = tpu.matmul %156, %157, %cst_76 {dimension_numbers = #tpu.dot_dimension_numbers<[1], [0], [0], [1], [0, 0, 1, 1], [], []>} : vector<2x16xf32>, vector<16x16xf32>, vector<2x16xf32> -> vector<2x16xf32>
    %cst_77 = arith.constant dense<0.000000e+00> : vector<2xf32>
    %159 = vector.multi_reduction <add>, %158, %cst_77 [1] : vector<2x16xf32> to vector<2xf32>
    %160 = vector.shape_cast %159 : vector<2xf32> to vector<2x1xf32>
    %cst_78 = arith.constant 1.600000e+01 : f32
    %161 = vector.broadcast %cst_78 : f32 to vector<2x1xf32>
    %162 = arith.divf %160, %161 : vector<2x1xf32>
    %163 = vector.broadcast %162 : vector<2x1xf32> to vector<2x16xf32>
    %164 = arith.subf %158, %163 : vector<2x16xf32>
    %165 = arith.mulf %164, %164 : vector<2x16xf32>
    %cst_79 = arith.constant dense<0.000000e+00> : vector<2xf32>
    %166 = vector.multi_reduction <add>, %165, %cst_79 [1] : vector<2x16xf32> to vector<2xf32>
    %167 = vector.shape_cast %166 : vector<2xf32> to vector<2x1xf32>
    %cst_80 = arith.constant 1.600000e+01 : f32
    %168 = vector.broadcast %cst_80 : f32 to vector<2x1xf32>
    %169 = arith.divf %167, %168 : vector<2x1xf32>
    %170 = vector.broadcast %162 : vector<2x1xf32> to vector<2x16xf32>
    %171 = arith.subf %158, %170 : vector<2x16xf32>
    %cst_81 = arith.constant 9.99999974E-6 : f32
    %172 = vector.broadcast %cst_81 : f32 to vector<2x1xf32>
    %173 = arith.addf %169, %172 : vector<2x1xf32>
    %174 = math.rsqrt %173 : vector<2x1xf32>
    %175 = vector.broadcast %174 : vector<2x1xf32> to vector<2x16xf32>
    %176 = arith.mulf %171, %175 : vector<2x16xf32>
    %177 = arith.addf %176, %106 : vector<2x16xf32>
    %cst_82 = arith.constant 0.000000e+00 : f32
    %178 = vector.broadcast %cst_82 : f32 to vector<2x16xf32>
    %179 = arith.cmpf oge, %177, %178 : vector<2x16xf32>
    %cst_83 = arith.constant 2.000000e-01 : f32
    %180 = vector.broadcast %cst_83 : f32 to vector<2x16xf32>
    %181 = arith.mulf %180, %177 : vector<2x16xf32>
    %182 = arith.select %179, %177, %181 : vector<2x16xi1>, vector<2x16xf32>
    %c0_84 = arith.constant 0 : index
    %c0_85 = arith.constant 0 : index
    %183 = vector.load %arg14[%c0_84, %c0_85] : memref<16x1xf32, #tpu.memory_space<vmem>>, vector<16x1xf32>
    %cst_86 = arith.constant dense<0.000000e+00> : vector<2x1xf32>
    %184 = tpu.matmul %182, %183, %cst_86 {dimension_numbers = #tpu.dot_dimension_numbers<[1], [0], [0], [1], [0, 0, 1, 1], [], []>} : vector<2x16xf32>, vector<16x1xf32>, vector<2x1xf32> -> vector<2x1xf32>
    %c0_87 = arith.constant 0 : index
    %c0_88 = arith.constant 0 : index
    %185 = vector.load %arg15[%c0_87, %c0_88] : memref<1x1xf32, #tpu.memory_space<vmem>>, vector<1x1xf32>
    %186 = vector.broadcast %185 : vector<1x1xf32> to vector<2x1xf32>
    %187 = arith.addf %184, %186 : vector<2x1xf32>
    %c0_89 = arith.constant 0 : index
    %c0_90 = arith.constant 0 : index
    %188 = vector.load %arg16[%c0_89, %c0_90] : memref<2x1xf32, #tpu.memory_space<vmem>>, vector<2x1xf32>
    tpu.vector_store %arg16[%c0_89, %c0_90], %187 {strides = array<i32>} : memref<2x1xf32, #tpu.memory_space<vmem>>, vector<2x1xf32>,
    return
  }
  func.func @transform_0(%arg0: i32) -> (i32, i32, i32) {
    %c0_i32 = arith.constant 0 : i32
    %c0_i32_0 = arith.constant 0 : i32
    %c0_i32_1 = arith.constant 0 : i32
    return %arg0, %c0_i32, %c0_i32_0 : i32, i32, i32
  }
  func.func @transform_1(%arg0: i32) -> (i32, i32) {
    %c0_i32 = arith.constant 0 : i32
    %c0_i32_0 = arith.constant 0 : i32
    return %arg0, %c0_i32 : i32, i32
  }
  func.func @transform_2(%arg0: i32) -> (i32, i32) {
    %c0_i32 = arith.constant 0 : i32
    %c0_i32_0 = arith.constant 0 : i32
    %c0_i32_1 = arith.constant 0 : i32
    return %c0_i32, %c0_i32_0 : i32, i32
  }
  func.func @transform_3(%arg0: i32) -> (i32, i32) {
    %c0_i32 = arith.constant 0 : i32
    %c0_i32_0 = arith.constant 0 : i32
    %c0_i32_1 = arith.constant 0 : i32
    return %c0_i32, %c0_i32_0 : i32, i32
  }
  func.func @transform_4(%arg0: i32) -> (i32, i32) {
    %c0_i32 = arith.constant 0 : i32
    %c0_i32_0 = arith.constant 0 : i32
    %c0_i32_1 = arith.constant 0 : i32
    return %c0_i32, %c0_i32_0 : i32, i32
  }
  func.func @transform_5(%arg0: i32) -> (i32, i32) {
    %c0_i32 = arith.constant 0 : i32
    %c0_i32_0 = arith.constant 0 : i32
    %c0_i32_1 = arith.constant 0 : i32
    return %c0_i32, %c0_i32_0 : i32, i32
  }
  func.func @transform_6(%arg0: i32) -> (i32, i32) {
    %c0_i32 = arith.constant 0 : i32
    %c0_i32_0 = arith.constant 0 : i32
    %c0_i32_1 = arith.constant 0 : i32
    return %c0_i32, %c0_i32_0 : i32, i32
  }
  func.func @transform_7(%arg0: i32) -> (i32, i32) {
    %c0_i32 = arith.constant 0 : i32
    %c0_i32_0 = arith.constant 0 : i32
    %c0_i32_1 = arith.constant 0 : i32
    return %c0_i32, %c0_i32_0 : i32, i32
  }
  func.func @transform_8(%arg0: i32) -> (i32, i32) {
    %c0_i32 = arith.constant 0 : i32
    %c0_i32_0 = arith.constant 0 : i32
    %c0_i32_1 = arith.constant 0 : i32
    return %c0_i32, %c0_i32_0 : i32, i32
  }
  func.func @transform_9(%arg0: i32) -> (i32, i32) {
    %c0_i32 = arith.constant 0 : i32
    %c0_i32_0 = arith.constant 0 : i32
    %c0_i32_1 = arith.constant 0 : i32
    return %c0_i32, %c0_i32_0 : i32, i32
  }
  func.func @transform_10(%arg0: i32) -> (i32, i32) {
    %c0_i32 = arith.constant 0 : i32
    %c0_i32_0 = arith.constant 0 : i32
    %c0_i32_1 = arith.constant 0 : i32
    return %c0_i32, %c0_i32_0 : i32, i32
  }
  func.func @transform_11(%arg0: i32) -> (i32, i32) {
    %c0_i32 = arith.constant 0 : i32
    %c0_i32_0 = arith.constant 0 : i32
    %c0_i32_1 = arith.constant 0 : i32
    return %c0_i32, %c0_i32_0 : i32, i32
  }
  func.func @transform_12(%arg0: i32) -> (i32, i32) {
    %c0_i32 = arith.constant 0 : i32
    %c0_i32_0 = arith.constant 0 : i32
    %c0_i32_1 = arith.constant 0 : i32
    return %c0_i32, %c0_i32_0 : i32, i32
  }
  func.func @transform_13(%arg0: i32) -> (i32, i32) {
    %c0_i32 = arith.constant 0 : i32
    %c0_i32_0 = arith.constant 0 : i32
    %c0_i32_1 = arith.constant 0 : i32
    return %c0_i32, %c0_i32_0 : i32, i32
  }
  func.func @transform_14(%arg0: i32) -> (i32, i32) {
    %c0_i32 = arith.constant 0 : i32
    %c0_i32_0 = arith.constant 0 : i32
    %c0_i32_1 = arith.constant 0 : i32
    return %c0_i32, %c0_i32_0 : i32, i32
  }
  func.func @transform_15(%arg0: i32) -> (i32, i32) {
    %c0_i32 = arith.constant 0 : i32
    %c0_i32_0 = arith.constant 0 : i32
    return %arg0, %c0_i32 : i32, i32
  }
}

</mosaic_0001>

<bundles_post_ra>
// kernel: neg.11
= control target key start
LH: loop header
LB: loop body
LE: loop exit
PB: predicated region body
PF: predicated region fallthrough
CT: control target
= control target key end

     0   :  { %s24_s0 = inlined_call_operand.vmem [shape: f32[2,16], index: 0, kind: input, shape index: {}]   ;;  %s25_s1 = inlined_call_operand.vmem [shape: f32[2,16], index: 1, kind: output, shape index: {}]  }
   0x1   :  { %v2_v0 = vld [vmem:[%s24_s0] sm:$0x3] }
   0x2   :  { %v5_v1 = vxor.u32 2147483648, %v2_v0 }
   0x4   :  { %7 = vst [vmem:[%s25_s1] sm:$0x3] %v5_v1 }

// kernel: _lambda_.3
= control target key start
LH: loop header
LB: loop body
LE: loop exit
PB: predicated region body
PF: predicated region fallthrough
CT: control target
= control target key end

     0   :  { %9 = vsyncpa [#allocation3], 0  ;;  %s1246_s0 = inlined_call_operand.hbm [shape: bf16[4,32,16], index: 0, kind: input, shape index: {}]   ;;  %s1247_s1 = inlined_call_operand.hbm [shape: bf16[32,11], index: 1, kind: input, shape index: {}]   ;;  %s1248_s2 = inlined_call_operand.hbm [shape: bf16[11,15], index: 2, kind: input, shape index: {}]   ;;  %s1249_s3 = inlined_call_operand.hbm [shape: bf16[15,16], index: 3, kind: input, shape index: {}]   ;;  %s1250_s4 = inlined_call_operand.hbm [shape: f32[32,16], index: 4, kind: output, shape index: {}]  }
   0x1   :  { %10 = vsyncpa [#allocation6], 0 }
   0x2   :  { %11 = vsyncpa [#allocation9], 0 }
   0x3   :  { %12 = vsyncpa [#allocation4], 0  ;;  %s996_s15 = smov [#allocation5]   ;;  %s997_s17 = smov [#allocation2]  }
   0x4   :  { %s30_s16 = sshll.u32 %s996_s15, 4  ;;  %s18_s18 = sshll.u32 %s997_s17, 4  ;;  %s31_s16 = int_to_ptr.vmem [resolvable:$true] %s30_s16  ;;  %s1032_s18 = int_to_ptr.vmem [resolvable:$true] %s18_s18 }
   0x5   :  { %s878_s21 = scalar_lea.hbm %s1247_s1, 256 }
   0x6   :  { %p879_p0 = scmp.ne.s32.totalorder %s1247_s1, %s878_s21  ;;  %p882_p1 = scmp.lt.u32.totalorder %s878_s21, %s1247_s1 }
   0x8   :  { %p884_p2 = pnand %p882_p1, %p879_p0 }
   0xa   :  { %887 = shalt.err (!%p884_p2)
}
   0xb   :  { %s888_s26 = scalar_lea.vmem %s31_s16, 256  ;;  %p893_p4 = scmp.lt.s32.totalorder %s31_s16, %s31_s16 }
   0xc   :  { %p889_p3 = scmp.ne.s32.totalorder %s31_s16, %s888_s26  ;;  %p894_p5 = scmp.lt.s32.totalorder %s888_s26, %s888_s26 }
   0xe   :  { %p895_p6 = por %p894_p5, %p893_p4 }
  0x10   :  { %p896_p7 = pnand %p895_p6, %p889_p3 }
  0x12   :  { %899 = shalt.err (!%p896_p7)
}
  0x13   :  { %s998_s27 = smov 64   ;;  %s999_s28 = smov 4  }
  0x14   :  { %36 = dma.hbm_to_vmem [thread:$0]  %s1247_s1, 256, %s31_s16, [#allocation6], %s998_s27, %s998_s27, %s999_s28  }
  0x15   :  { %s900_s7 = scalar_lea.hbm %s1246_s0, 1024 }
  0x16   :  { %p901_p8 = scmp.ne.s32.totalorder %s1246_s0, %s900_s7  ;;  %p904_p9 = scmp.lt.u32.totalorder %s900_s7, %s1246_s0 }
  0x18   :  { %p906_p10 = pnand %p904_p9, %p901_p8 }
  0x1a   :  { %909 = shalt.err (!%p906_p10)
}
  0x1b   :  { %s910_s12 = scalar_lea.vmem %s1032_s18, 1024  ;;  %p915_p12 = scmp.lt.s32.totalorder %s1032_s18, %s1032_s18 }
  0x1c   :  { %p911_p11 = scmp.ne.s32.totalorder %s1032_s18, %s910_s12  ;;  %p916_p13 = scmp.lt.s32.totalorder %s910_s12, %s910_s12 }
  0x1e   :  { %p917_p0 = por %p916_p13, %p915_p12 }
  0x20   :  { %p918_p1 = pnand %p917_p0, %p911_p11 }
  0x22   :  { %921 = shalt.err (!%p918_p1)
}
  0x23   :  { %24 = dma.hbm_to_vmem [thread:$0]  %s1246_s0, 1024, %s1032_s18, [#allocation3], %s998_s27, %s998_s27, %s999_s28  }
  0x24   :  { %s1000_s14 = smov [#allocation7]   ;;  %s1001_s16 = smov [#allocation8]  }
  0x25   :  { %s42_s15 = sshll.u32 %s1000_s14, 4  ;;  %s54_s17 = sshll.u32 %s1001_s16, 4  ;;  %s43_s15 = int_to_ptr.vmem [resolvable:$true] %s42_s15  ;;  %s1069_s17 = int_to_ptr.vmem [resolvable:$true] %s54_s17 }
  0x26   :  { %s922_s21 = scalar_lea.hbm %s1248_s2, 128 }
  0x27   :  { %p923_p2 = scmp.ne.s32.totalorder %s1248_s2, %s922_s21  ;;  %p926_p3 = scmp.lt.u32.totalorder %s922_s21, %s1248_s2 }
  0x29   :  { %p928_p4 = pnand %p926_p3, %p923_p2 }
  0x2b   :  { %931 = shalt.err (!%p928_p4)
}
  0x2c   :  { %s932_s0 = scalar_lea.vmem %s43_s15, 128  ;;  %p937_p6 = scmp.lt.s32.totalorder %s43_s15, %s43_s15 }
  0x2d   :  { %p933_p5 = scmp.ne.s32.totalorder %s43_s15, %s932_s0  ;;  %p938_p7 = scmp.lt.s32.totalorder %s932_s0, %s932_s0 }
  0x2f   :  { %p939_p8 = por %p938_p7, %p937_p6 }
  0x31   :  { %p940_p9 = pnand %p939_p8, %p933_p5 }
  0x33   :  { %943 = shalt.err (!%p940_p9)
}
  0x34   :  { %48 = dma.hbm_to_vmem [thread:$0]  %s1248_s2, 128, %s43_s15, [#allocation6], %s998_s27, %s998_s27, %s999_s28  }
  0x35   :  { %s944_s5 = scalar_lea.hbm %s1249_s3, 128 }
  0x36   :  { %p945_p10 = scmp.ne.s32.totalorder %s1249_s3, %s944_s5  ;;  %p948_p11 = scmp.lt.u32.totalorder %s944_s5, %s1249_s3 }
  0x38   :  { %p950_p12 = pnand %p948_p11, %p945_p10 }
  0x3a   :  { %953 = shalt.err (!%p950_p12)
}
  0x3b   :  { %s954_s10 = scalar_lea.vmem %s1069_s17, 128  ;;  %p959_p0 = scmp.lt.s32.totalorder %s1069_s17, %s1069_s17 }
  0x3c   :  { %p955_p13 = scmp.ne.s32.totalorder %s1069_s17, %s954_s10  ;;  %p960_p1 = scmp.lt.s32.totalorder %s954_s10, %s954_s10 }
  0x3e   :  { %p961_p2 = por %p960_p1, %p959_p0 }
  0x40   :  { %p962_p3 = pnand %p961_p2, %p955_p13 }
  0x42   :  { %965 = shalt.err (!%p962_p3)
}
  0x43   :  { %60 = dma.hbm_to_vmem [thread:$0]  %s1249_s3, 128, %s1069_s17, [#allocation9], %s998_s27, %s998_s27, %s999_s28  }
  0x44   :  { %988 = dma.done.wait [#allocation3], 1024  }
  0x45   :  { %989 = vsyncadd [#allocation3], 4294966272 }
  0x46   :  { %990 = dma.done.wait [#allocation6], 384  }
  0x47   :  { %991 = vsyncadd [#allocation6], 4294966912 }
  0x48   :  { %992 = dma.done.wait [#allocation9], 128  }
  0x49   :  { %993 = vsyncadd [#allocation9], 4294967168  ;;  %vm230_vm0 = vcmask 1044480   ;;  %vm231_vm1 = vcmask 1045504   ;;  %v1002_v0 = vmov 65535   ;;  %v1003_v2 = vmov 15  }
  0x4a   :  { %v232_v1 = vsel %vm230_vm0, 4294967295, %v1002_v0  ;;  %793 = vset.pattern.permute.xlu1 %v1003_v2  ;;  %792 = vset.pattern.permute.xlu0 %v1003_v2  ;;  %vm223_vm2 = vcmask 89088   ;;  %v794_v4 = vld [vmem:[#allocation7] sm:$0x3f]   ;;  %v795_v5 = vld [vmem:[#allocation5] sm:$0xff]   ;;  %v1108_v7 = vld [vmem:[#allocation2 + $0x18] sm:$0xff]  }
  0x4b   :  { %v233_v3 = vsel %vm231_vm1, %v232_v1, 0  ;;  %757 = vmatprep.mubr.msk.bf16.mxu0 %vm223_vm2, %v795_v5  ;;  %v1110_v8 = vld [vmem:[#allocation2 + $0x10] sm:$0xff]   ;;  %v1112_v9 = vld [vmem:[#allocation2 + $0x20] sm:$0xff]   ;;  %v796_v10 = vld [vmem:[#allocation5 + $0x8] sm:$0xff]   ;;  %v718_v11 = vunpack.c.l.bf16 %v1108_v7  ;;  %v719_v12 = vunpack.c.h.bf16 %v1108_v7  ;;  %vm462_vm3 = vcmask 1046528   ;;  %s1004_s3 = smov [#allocation10]  }
  0x4c   :  { %v235_v6 = vand.u32 %v794_v4, %v233_v3  ;;  %v714_v13 = vunpack.c.l.bf16 %v1110_v8  ;;  %v715_v14 = vunpack.c.h.bf16 %v1110_v8  ;;  %v1118_v15 = vld [vmem:[#allocation2 + $0x28] sm:$0xff]   ;;  %v723_v16 = vunpack.c.h.bf16 %v1112_v9  ;;  %v1122_v18 = vld [vmem:[#allocation2] sm:$0xff]   ;;  %v1152_v35 = vld [vmem:[#allocation2 + $0x30] sm:$0xff]   ;;  %s656_s27 = sshll.u32 %s1004_s3, 4  ;;  %s657_s27 = int_to_ptr.vmem [resolvable:$true] %s656_s27 }
  0x4d   :  { %v722_v17 = vunpack.c.l.bf16 %v1112_v9  ;;  %v676_v19 = vmul.f32 -1.442695, %v718_v11  ;;  %v677_v20 = vmul.f32 -1.442695, %v719_v12  ;;  %v727_v22 = vunpack.c.h.bf16 %v1118_v15  ;;  %v1140_v28 = vld [vmem:[#allocation2 + $0x8] sm:$0xff]   ;;  %v1162_v53 = vld [vmem:[#allocation2 + $0x38] sm:$0xff]   ;;  %p971_p5 = scmp.lt.s32.totalorder %s657_s27, %s657_s27 }
  0x4e   :  { %755 = vmatprep.subr.bf16.mxu0 %v235_v6  ;;  %v674_v21 = vmul.f32 -1.442695, %v714_v13  ;;  %v675_v23 = vmul.f32 -1.442695, %v715_v14  ;;  %v726_v24 = vunpack.c.l.bf16 %v1118_v15  ;;  %v679_v25 = vmul.f32 -1.442695, %v723_v16 }
  0x4f   :  { %756 = vmatpush3.bf16.msra.mxu0 %v235_v6  ;;  %798 = vpow2.f32 %v676_v19  ;;  %v707_v26 = vunpack.c.h.bf16 %v1122_v18  ;;  %v678_v27 = vmul.f32 -1.442695, %v722_v17  ;;  %v681_v29 = vmul.f32 -1.442695, %v727_v22  ;;  %s966_s28 = scalar_lea.vmem %s657_s27, 512 }
  0x50   :  { %800 = vpow2.f32 %v677_v20  ;;  %v680_v30 = vmul.f32 -1.442695, %v726_v24  ;;  %v706_v31 = vunpack.c.l.bf16 %v1122_v18  ;;  %v711_v33 = vunpack.c.h.bf16 %v1140_v28  ;;  %p967_p4 = scmp.ne.s32.totalorder %s657_s27, %s966_s28  ;;  %p972_p6 = scmp.lt.s32.totalorder %s966_s28, %s966_s28 }
  0x51   :  { %802 = vpow2.f32 %v674_v21  ;;  %v671_v32 = vmul.f32 -1.442695, %v707_v26  ;;  %v710_v37 = vunpack.c.l.bf16 %v1140_v28  ;;  %v731_v39 = vunpack.c.h.bf16 %v1152_v35 }
  0x52   :  { %758 = vmatmul.mubr.msk.bf16.vlgmr.msra.gmra.mrb[0].mxu0 %vm223_vm2, %v796_v10  ;;  %804 = vpow2.f32 %v675_v23  ;;  %v670_v34 = vmul.f32 -1.442695, %v706_v31  ;;  %v673_v36 = vmul.f32 -1.442695, %v711_v33  ;;  %v730_v57 = vunpack.c.l.bf16 %v1152_v35  ;;  %p973_p7 = por %p972_p6, %p971_p5 }
  0x53   :  { %806 = vpow2.f32 %v679_v25  ;;  %v672_v44 = vmul.f32 -1.442695, %v710_v37  ;;  %v683_v49 = vmul.f32 -1.442695, %v731_v39  ;;  %v735_v59 = vunpack.c.h.bf16 %v1162_v53 }
  0x54   :  { %808 = vpow2.f32 %v678_v27  ;;  %v734_v61 = vunpack.c.l.bf16 %v1162_v53  ;;  %v682_v2 = vmul.f32 -1.442695, %v730_v57  ;;  %vm463_vm4 = vcmask 1047552   ;;  %p974_p8 = pnand %p973_p7, %p967_p4 }
  0x55   :  { %810 = vpow2.f32 %v681_v29  ;;  %v685_v4 = vmul.f32 -1.442695, %v735_v59  ;;  %vm437_vm5 = vcmask 121856   ;;  %vm614_vm6 = vcmask 130048  }
  0x56   :  { %812 = vpow2.f32 %v680_v30  ;;  %v684_v6 = vmul.f32 -1.442695, %v734_v61 }
  0x57   :  { %814 = vpow2.f32 %v671_v32 }
  0x58   :  { %816 = vpow2.f32 %v670_v34 }
  0x59   :  { %v799_v38 = vpop.eup %798  ;;  %818 = vpow2.f32 %v673_v36 }
  0x5a   :  { %v801_v40 = vpop.eup %800  ;;  %v160_v41 = vadd.f32 1.0, %v799_v38 }
  0x5b   :  { %v803_v42 = vpop.eup %802  ;;  %v161_v43 = vadd.f32 1.0, %v801_v40 }
  0x5c   :  { %v805_v45 = vpop.eup %804  ;;  %820 = vrcp.f32 %v160_v41  ;;  %v158_v46 = vadd.f32 1.0, %v803_v42 }
  0x5d   :  { %v807_v47 = vpop.eup %806  ;;  %822 = vrcp.f32 %v161_v43  ;;  %v159_v48 = vadd.f32 1.0, %v805_v45 }
  0x5e   :  { %v809_v50 = vpop.eup %808  ;;  %824 = vrcp.f32 %v158_v46  ;;  %v163_v51 = vadd.f32 1.0, %v807_v47 }
  0x5f   :  { %v811_v52 = vpop.eup %810  ;;  %826 = vpow2.f32 %v672_v44  ;;  %v162_v55 = vadd.f32 1.0, %v809_v50 }
  0x60   :  { %v813_v54 = vpop.eup %812  ;;  %828 = vrcp.f32 %v159_v48  ;;  %v165_v58 = vadd.f32 1.0, %v811_v52 }
  0x61   :  { %v815_v56 = vpop.eup %814  ;;  %830 = vpow2.f32 %v683_v49  ;;  %v164_v60 = vadd.f32 1.0, %v813_v54  ;;  %v464_v54 = vsel %vm462_vm3, 4294967295, %v1002_v0 }
  0x62   :  { %832 = vrcp.f32 %v163_v51  ;;  %v817_v62 = vpop.eup %816  ;;  %v155_v63 = vadd.f32 1.0, %v815_v56  ;;  %v797_v56 = vld [vmem:[#allocation8] sm:$0xff]  }
  0x63   :  { %834 = vrcp.f32 %v162_v55  ;;  %v819_v1 = vpop.eup %818  ;;  %v154_v19 = vadd.f32 1.0, %v817_v62  ;;  %v465_v55 = vsel %vm463_vm4, %v464_v54, 0 }
  0x64   :  { %836 = vrcp.f32 %v165_v58  ;;  %v157_v23 = vadd.f32 1.0, %v819_v1  ;;  %v467_v58 = vand.u32 %v797_v56, %v465_v55 }
  0x65   :  { %838 = vrcp.f32 %v164_v60 }
  0x66   :  { %v821_v3 = vpop.eup %820  ;;  %840 = vrcp.f32 %v155_v63  ;;  %761 = vmatprep.subr.bf16.mxu0 %v467_v58  ;;  %779 = vmatprep.subr.bf16.mxu1 %v467_v58 }
  0x67   :  { %v823_v5 = vpop.eup %822  ;;  %342 = vperm.xlu1 %793, %v821_v3   ;;  %842 = vpow2.f32 %v682_v2  ;;  %762 = vmatpush3.bf16.msra.mxu0 %v467_v58 }
  0x68   :  { %v825_v10 = vpop.eup %824  ;;  %844 = vpow2.f32 %v685_v4  ;;  %780 = vmatpush3.bf16.msra.mxu1 %v467_v58 }
  0x69   :  { %v827_v20 = vpop.eup %826  ;;  %332 = vperm.xlu0 %792, %v825_v10   ;;  %846 = vpow2.f32 %v684_v6 }
  0x6a   :  { %v829_v21 = vpop.eup %828  ;;  %848 = vrcp.f32 %v154_v19  ;;  %v156_v29 = vadd.f32 1.0, %v827_v20 }
  0x6b   :  { %v831_v25 = vpop.eup %830  ;;  %347 = vperm.xlu1 %793, %v823_v5   ;;  %850 = vrcp.f32 %v157_v23 }
  0x6c   :  { %v833_v27 = vpop.eup %832  ;;  %v167_v32 = vadd.f32 1.0, %v831_v25  ;;  %852 = vrcp.f32 %v156_v29 }
  0x6d   :  { %337 = vperm.xlu0 %792, %v829_v21   ;;  %v835_v30 = vpop.eup %834 }
  0x6e   :  { %v837_v34 = vpop.eup %836  ;;  %854 = vrcp.f32 %v167_v32 }
  0x6f   :  { %357 = vperm.xlu1 %793, %v833_v27   ;;  %v839_v36 = vpop.eup %838 }
  0x70   :  { %v841_v38 = vpop.eup %840 }
  0x71   :  { %352 = vperm.xlu0 %792, %v835_v30   ;;  %v843_v40 = vpop.eup %842 }
  0x72   :  { %v845_v41 = vpop.eup %844  ;;  %v166_v42 = vadd.f32 1.0, %v843_v40 }
  0x73   :  { %367 = vperm.xlu1 %793, %v837_v34   ;;  %v847_v43 = vpop.eup %846  ;;  %v169_v44 = vadd.f32 1.0, %v845_v41 }
  0x74   :  { %v849_v45 = vpop.eup %848  ;;  %856 = vrcp.f32 %v166_v42  ;;  %v168_v46 = vadd.f32 1.0, %v847_v43 }
  0x75   :  { %362 = vperm.xlu0 %792, %v839_v36   ;;  %858 = vrcp.f32 %v169_v44  ;;  %v851_v47 = vpop.eup %850 }
  0x76   :  { %860 = vrcp.f32 %v168_v46  ;;  %v853_v48 = vpop.eup %852 }
  0x77   :  { %317 = vperm.xlu1 %793, %v841_v38  }
  0x78   :  { %v855_v49 = vpop.eup %854 }
  0x79   :  { %312 = vperm.xlu0 %792, %v849_v45  }
  0x7b   :  { %327 = vperm.xlu1 %793, %v851_v47  }
  0x7d   :  { %322 = vperm.xlu0 %792, %v853_v48  }
  0x7e   :  { %v857_v50 = vpop.eup %856 }
  0x7f   :  { %377 = vperm.xlu1 %793, %v855_v49   ;;  %v859_v51 = vpop.eup %858 }
  0x80   :  { %v861_v52 = vpop.eup %860 }
  0x81   :  { %372 = vperm.xlu0 %792, %v857_v50  }
  0x83   :  { %387 = vperm.xlu1 %793, %v859_v51  }
  0x85   :  { %382 = vperm.xlu0 %792, %v861_v52  }
  0xe6   :  { %v343_v62 = vpop.permute.xlu1 %342 }
  0xe7   :  { %v396_v48 = vmul.f32 %v718_v11, %v343_v62 }
  0xe8   :  { %v333_v60 = vpop.permute.xlu0 %332 }
  0xe9   :  { %v394_v49 = vmul.f32 %v714_v13, %v333_v60 }
  0xea   :  { %v348_v1 = vpop.permute.xlu1 %347 }
  0xeb   :  { %v397_v50 = vmul.f32 %v719_v12, %v348_v1 }
  0xec   :  { %v338_v63 = vpop.permute.xlu0 %337 }
  0xed   :  { %v395_v51 = vmul.f32 %v715_v14, %v338_v63 }
  0xee   :  { %v358_v3 = vpop.permute.xlu1 %357 }
  0xef   :  { %v399_v54 = vmul.f32 %v723_v16, %v358_v3 }
  0xf0   :  { %v353_v2 = vpop.permute.xlu0 %352 }
  0xf1   :  { %v398_v55 = vmul.f32 %v722_v17, %v353_v2 }
  0xf2   :  { %v368_v5 = vpop.permute.xlu1 %367 }
  0xf3   :  { %v401_v11 = vmul.f32 %v727_v22, %v368_v5 }
  0xf4   :  { %v363_v4 = vpop.permute.xlu0 %362 }
  0xf5   :  { %v400_v13 = vmul.f32 %v726_v24, %v363_v4 }
  0xf6   :  { %v318_v29 = vpop.permute.xlu1 %317 }
  0xf7   :  { %v391_v7 = vmul.f32 %v707_v26, %v318_v29 }
  0xf8   :  { %v313_v27 = vpop.permute.xlu0 %312 }
  0xf9   :  { %v390_v8 = vmul.f32 %v706_v31, %v313_v27 }
  0xfa   :  { %v328_v32 = vpop.permute.xlu1 %327 }
  0xfb   :  { %v393_v16 = vmul.f32 %v711_v33, %v328_v32 }
  0xfc   :  { %v323_v30 = vpop.permute.xlu0 %322 }
  0xfd   :  { %v392_v12 = vmul.f32 %v710_v37, %v323_v30 }
  0xfe   :  { %v378_v46 = vpop.permute.xlu1 %377 }
  0xff   :  { %v403_v15 = vmul.f32 %v731_v39, %v378_v46 }
 0x100   :  { %v373_v44 = vpop.permute.xlu0 %372 }
 0x101   :  { %v402_v17 = vmul.f32 %v730_v57, %v373_v44 }
 0x102   :  { %v388_v52 = vpop.permute.xlu1 %387 }
 0x103   :  { %v405_v18 = vmul.f32 %v735_v59, %v388_v52 }
 0x104   :  { %v383_v47 = vpop.permute.xlu0 %382 }
 0x105   :  { %v404_v14 = vmul.f32 %v734_v61, %v383_v47 }
 0x125   :  { %v759_v6 = vpop.f32.mrb[0].mxu0 }
 0x126   :  { %v693_v10 = vmul.f32 -1.442695, %v759_v6  ;;  %v271_v19 = vpop.f32.mrb[1].mxu0 }
 0x127   :  { %v691_v20 = vmul.f32 -1.442695, %v271_v19  ;;  %v760_v0 = vpop.f32.mrb[2].mxu0 }
 0x128   :  { %862 = vpow2.f32 %v693_v10  ;;  %v694_v21 = vmul.f32 -1.442695, %v760_v0  ;;  %v274_v23 = vpop.f32.mrb[3].mxu0 }
 0x129   :  { %864 = vpow2.f32 %v691_v20  ;;  %v692_v25 = vmul.f32 -1.442695, %v274_v23 }
 0x12a   :  { %866 = vpow2.f32 %v694_v21 }
 0x12b   :  { %868 = vpow2.f32 %v692_v25 }
 0x132   :  { %v863_v34 = vpop.eup %862 }
 0x133   :  { %v865_v36 = vpop.eup %864  ;;  %v300_v38 = vadd.f32 1.0, %v863_v34 }
 0x134   :  { %v867_v40 = vpop.eup %866  ;;  %v298_v41 = vadd.f32 1.0, %v865_v36 }
 0x135   :  { %v869_v42 = vpop.eup %868  ;;  %870 = vrcp.f32 %v300_v38  ;;  %v301_v43 = vadd.f32 1.0, %v867_v40 }
 0x136   :  { %872 = vrcp.f32 %v298_v41  ;;  %v299_v45 = vadd.f32 1.0, %v869_v42 }
 0x137   :  { %874 = vrcp.f32 %v301_v43 }
 0x138   :  { %876 = vrcp.f32 %v299_v45 }
 0x13f   :  { %v871_v9 = vpop.eup %870 }
 0x140   :  { %v873_v22 = vpop.eup %872  ;;  %v416_v24 = vadd.f32 %v871_v9, %v400_v13  ;;  %v408_v26 = vadd.f32 %v871_v9, %v392_v12  ;;  %v420_v31 = vadd.f32 %v871_v9, %v404_v14  ;;  %v412_v37 = vadd.f32 %v871_v9, %v396_v48 }
 0x141   :  { %v875_v56 = vpop.eup %874  ;;  %v406_v61 = vadd.f32 %v873_v22, %v390_v8  ;;  %v418_v58 = vadd.f32 %v873_v22, %v402_v17  ;;  %v410_v60 = vadd.f32 %v873_v22, %v394_v49  ;;  %v414_v28 = vadd.f32 %v873_v22, %v398_v55 }
 0x142   :  { %v877_v33 = vpop.eup %876  ;;  %v409_v62 = vadd.f32 %v875_v56, %v393_v16  ;;  %v421_v63 = vadd.f32 %v875_v56, %v405_v18  ;;  %v413_v39 = vadd.f32 %v875_v56, %v397_v50  ;;  %v417_v1 = vadd.f32 %v875_v56, %v401_v11 }
 0x143   :  { %v407_v35 = vadd.f32 %v877_v33, %v391_v7  ;;  %v419_v57 = vadd.f32 %v877_v33, %v403_v15  ;;  %v411_v2 = vadd.f32 %v877_v33, %v395_v51  ;;  %v415_v53 = vadd.f32 %v877_v33, %v399_v54 }
 0x144   :  { %v423_v59 = vpack.c.bf16 %v409_v62, %v408_v26  ;;  %v429_v3 = vpack.c.bf16 %v421_v63, %v420_v31  ;;  %v425_v4 = vpack.c.bf16 %v413_v39, %v412_v37  ;;  %v427_v5 = vpack.c.bf16 %v417_v1, %v416_v24 }
 0x145   :  { %v422_v6 = vpack.c.bf16 %v407_v35, %v406_v61  ;;  %v428_v10 = vpack.c.bf16 %v419_v57, %v418_v58  ;;  %v424_v19 = vpack.c.bf16 %v411_v2, %v410_v60  ;;  %v426_v20 = vpack.c.bf16 %v415_v53, %v414_v28 }
 0x147   :  { %763 = vmatprep.mubr.msk.bf16.mxu0 %vm437_vm5, %v422_v6  ;;  %767 = vmatprep.mubr.msk.bf16.mxu1 %vm437_vm5, %v424_v19 }
 0x148   :  { %764 = vmatmul.mubr.msk.bf16.vlgmr.msra.gmra.mrb[4].mxu0 %vm437_vm5, %v423_v59  ;;  %768 = vmatmul.mubr.msk.bf16.vlgmr.msra.gmra.mrb[0].mxu1 %vm437_vm5, %v425_v4 }
 0x149   :  { %771 = vmatprep.mubr.msk.bf16.mxu1 %vm437_vm5, %v426_v20 }
 0x150   :  { %772 = vmatmul.mubr.msk.bf16.gmra.mrb[4].mxu1 %vm437_vm5, %v427_v5 }
 0x151   :  { %775 = vmatprep.mubr.msk.bf16.mxu1 %vm437_vm5, %v428_v10 }
 0x158   :  { %776 = vmatmul.mubr.msk.bf16.gmra.mrb[8].mxu1 %vm437_vm5, %v429_v3 }
 0x21b   :  { %v765_v0 = vpop.f32.mrb[4].mxu0  ;;  %v769_v21 = vpop.f32.mrb[0].mxu1 }
 0x21c   :  { %vm568_vm7 = vcmp.ge.f32.partialorder %v765_v0, 0.0  ;;  %v584_v23 = vmul.f32 0.02, %v765_v0  ;;  %vm572_vm8 = vcmp.ge.f32.partialorder %v769_v21, 0.0  ;;  %v588_v25 = vmul.f32 0.02, %v769_v21 }
 0x21d   :  { %v503_v27 = vpop.f32.mrb[5].mxu0  ;;  %v519_v29 = vpop.f32.mrb[1].mxu1 }
 0x21e   :  { %v600_v30 = vsel %vm568_vm7, %v765_v0, %v584_v23  ;;  %v604_v32 = vsel %vm572_vm8, %v769_v21, %v588_v25  ;;  %vm566_vm9 = vcmp.ge.f32.partialorder %v503_v27, 0.0  ;;  %v582_v34 = vmul.f32 0.02, %v503_v27  ;;  %v766_v36 = vpop.f32.mrb[6].mxu0  ;;  %v770_v38 = vpop.f32.mrb[2].mxu1 }
 0x21f   :  { %v629_v40 = vsel %vm614_vm6, %v600_v30, 0.0  ;;  %v630_v41 = vsel %vm614_vm6, %v604_v32, 0.0  ;;  %vm570_vm10 = vcmp.ge.f32.partialorder %v519_v29, 0.0  ;;  %v586_v42 = vmul.f32 0.02, %v519_v29  ;;  %v506_v43 = vpop.f32.mrb[7].mxu0 }
 0x220   :  { %v631_v44 = vadd.f32 %v630_v41, %v629_v40  ;;  %v598_v45 = vsel %vm566_vm9, %v503_v27, %v582_v34  ;;  %vm569_vm11 = vcmp.ge.f32.partialorder %v766_v36, 0.0  ;;  %v585_v46 = vmul.f32 0.02, %v766_v36  ;;  %v522_v47 = vpop.f32.mrb[3].mxu1 }
 0x221   :  { %v615_v48 = vsel %vm614_vm6, %v598_v45, 0.0  ;;  %v602_v49 = vsel %vm570_vm10, %v519_v29, %v586_v42  ;;  %vm573_vm12 = vcmp.ge.f32.partialorder %v770_v38, 0.0  ;;  %v589_v50 = vmul.f32 0.02, %v770_v38 }
 0x222   :  { %v616_v51 = vsel %vm614_vm6, %v602_v49, 0.0  ;;  %v601_v52 = vsel %vm569_vm11, %v766_v36, %v585_v46  ;;  %vm567_vm13 = vcmp.ge.f32.partialorder %v506_v43, 0.0  ;;  %v583_v54 = vmul.f32 0.02, %v506_v43 }
 0x223   :  { %v617_v55 = vadd.f32 %v616_v51, %v615_v48  ;;  %v636_v11 = vsel %vm614_vm6, %v601_v52, 0.0  ;;  %v605_v13 = vsel %vm573_vm12, %v770_v38, %v589_v50  ;;  %vm571_vm14 = vcmp.ge.f32.partialorder %v522_v47, 0.0  ;;  %v773_v7 = vpop.f32.mrb[4].mxu1 }
 0x224   :  { %v637_v8 = vsel %vm614_vm6, %v605_v13, 0.0  ;;  %v599_v12 = vsel %vm567_vm13, %v506_v43, %v583_v54  ;;  %v587_v14 = vmul.f32 0.02, %v522_v47  ;;  %vm576_vm15 = vcmp.ge.f32.partialorder %v773_v7, 0.0  ;;  %v535_v9 = vpop.f32.mrb[5].mxu1 }
 0x225   :  { %v638_v16 = vadd.f32 %v637_v8, %v636_v11  ;;  %v622_v15 = vsel %vm614_vm6, %v599_v12, 0.0  ;;  %v592_v17 = vmul.f32 0.02, %v773_v7  ;;  %vm574_vm0 = vcmp.ge.f32.partialorder %v535_v9, 0.0  ;;  %v774_v18 = vpop.f32.mrb[6].mxu1 }
 0x226   :  { %v603_v22 = vsel %vm571_vm14, %v522_v47, %v587_v14  ;;  %v590_v24 = vmul.f32 0.02, %v535_v9  ;;  %vm577_vm1 = vcmp.ge.f32.partialorder %v774_v18, 0.0  ;;  %v593_v26 = vmul.f32 0.02, %v774_v18  ;;  %v538_v31 = vpop.f32.mrb[7].mxu1 }
 0x227   :  { %v623_v37 = vsel %vm614_vm6, %v603_v22, 0.0  ;;  %v608_v56 = vsel %vm576_vm15, %v773_v7, %v592_v17  ;;  %vm575_vm2 = vcmp.ge.f32.partialorder %v538_v31, 0.0  ;;  %v591_v61 = vmul.f32 0.02, %v538_v31 }
 0x228   :  { %v624_v58 = vadd.f32 %v623_v37, %v622_v15  ;;  %v632_v60 = vsel %vm614_vm6, %v608_v56, 0.0  ;;  %v606_v28 = vsel %vm574_vm0, %v535_v9, %v590_v24  ;;  %v609_v33 = vsel %vm577_vm1, %v774_v18, %v593_v26 }
 0x229   :  { %v633_v62 = vadd.f32 %v632_v60, %v631_v44  ;;  %v618_v63 = vsel %vm614_vm6, %v606_v28, 0.0  ;;  %v639_v39 = vsel %vm614_vm6, %v609_v33, 0.0  ;;  %v607_v1 = vsel %vm575_vm2, %v538_v31, %v591_v61 }
 0x22a   :  { %v619_v35 = vadd.f32 %v618_v63, %v617_v55  ;;  %v640_v57 = vadd.f32 %v639_v39, %v638_v16  ;;  %v625_v2 = vsel %vm614_vm6, %v607_v1, 0.0 }
 0x22b   :  { %v626_v53 = vadd.f32 %v625_v2, %v624_v58  ;;  %v777_v59 = vpop.f32.mrb[8].mxu1 }
 0x22c   :  { %vm580_vm3 = vcmp.ge.f32.partialorder %v777_v59, 0.0  ;;  %v596_v3 = vmul.f32 0.02, %v777_v59  ;;  %v551_v4 = vpop.f32.mrb[9].mxu1 }
 0x22d   :  { %vm578_vm4 = vcmp.ge.f32.partialorder %v551_v4, 0.0  ;;  %v594_v5 = vmul.f32 0.02, %v551_v4  ;;  %v778_v6 = vpop.f32.mrb[10].mxu1 }
 0x22e   :  { %v612_v10 = vsel %vm580_vm3, %v777_v59, %v596_v3  ;;  %vm581_vm5 = vcmp.ge.f32.partialorder %v778_v6, 0.0  ;;  %v597_v19 = vmul.f32 0.02, %v778_v6  ;;  %v554_v20 = vpop.f32.mrb[11].mxu1 }
 0x22f   :  { %v634_v0 = vsel %vm614_vm6, %v612_v10, 0.0  ;;  %v610_v21 = vsel %vm578_vm4, %v551_v4, %v594_v5  ;;  %vm579_vm7 = vcmp.ge.f32.partialorder %v554_v20, 0.0  ;;  %v595_v23 = vmul.f32 0.02, %v554_v20 }
 0x230   :  { %v635_v25 = vadd.f32 %v634_v0, %v633_v62  ;;  %v620_v27 = vsel %vm614_vm6, %v610_v21, 0.0  ;;  %v613_v29 = vsel %vm581_vm5, %v778_v6, %v597_v19 }
 0x231   :  { %v621_v30 = vadd.f32 %v620_v27, %v619_v35  ;;  %v641_v32 = vsel %vm614_vm6, %v613_v29, 0.0  ;;  %v611_v34 = vsel %vm579_vm7, %v554_v20, %v595_v23 }
 0x232   :  { %v645_v36 = vmul.f32 0.25, %v635_v25  ;;  %v642_v38 = vadd.f32 %v641_v32, %v640_v57  ;;  %v627_v40 = vsel %vm614_vm6, %v611_v34, 0.0 }
 0x233   :  { %v643_v41 = vmul.f32 0.25, %v621_v30  ;;  %v628_v42 = vadd.f32 %v627_v40, %v626_v53 }
 0x234   :  { %649 = vst.msk [vmem:[#allocation10 + $0x10] sm:$0xff] %vm614_vm6, %v645_v36  ;;  %v646_v43 = vmul.f32 0.25, %v642_v38 }
 0x235   :  { %647 = vst.msk [vmem:[#allocation10] sm:$0xff] %vm614_vm6, %v643_v41  ;;  %v644_v44 = vmul.f32 0.25, %v628_v42 }
 0x236   :  { %650 = vst.msk [vmem:[#allocation10 + $0x18] sm:$0xff] %vm614_vm6, %v646_v43 }
 0x237   :  { %648 = vst.msk [vmem:[#allocation10 + $0x8] sm:$0xff] %vm614_vm6, %v644_v44 }
 0x238   :  { %977 = shalt.err (!%p974_p8)
}
 0x239   :  { %s978_s13 = scalar_lea.hbm %s1250_s4, 512 }
 0x23a   :  { %p979_p9 = scmp.ne.s32.totalorder %s1250_s4, %s978_s13  ;;  %p982_p10 = scmp.lt.u32.totalorder %s978_s13, %s1250_s4 }
 0x23c   :  { %p984_p11 = pnand %p982_p10, %p979_p9 }
 0x23e   :  { %987 = shalt.err (!%p984_p11)
}
 0x23f   :  { %s1005_s19 = smov 128   ;;  %s1006_s20 = smov 8  }
 0x240   :  { %662 = dma.vmem_to_hbm [thread:$0]  %s657_s27, 512, %s1250_s4, [#allocation4], %s1005_s19, %s1005_s19, %s1006_s20  }
 0x241   :  { %994 = dma.done.wait [#allocation4], 512  }
 0x242   :  { %995 = vsyncadd [#allocation4], 4294966784 }
 0x243   :  { %666 = vsyncpa [#allocation3], 1 }
 0x244   :  { %667 = vsyncpa [#allocation6], 1 }
 0x245   :  { %668 = vsyncpa [#allocation9], 1 }
 0x246   :  { %669 = vsyncpa [#allocation4], 1 }

// kernel: _lambda_.4
= control target key start
LH: loop header
LB: loop body
LE: loop exit
PB: predicated region body
PF: predicated region fallthrough
CT: control target
= control target key end

     0   :  { %9 = vsyncpa [#allocation3], 0  ;;  %s1246_s0 = inlined_call_operand.hbm [shape: bf16[4,32,21], index: 0, kind: input, shape index: {}]   ;;  %s1247_s1 = inlined_call_operand.hbm [shape: bf16[32,16], index: 1, kind: input, shape index: {}]   ;;  %s1248_s2 = inlined_call_operand.hbm [shape: bf16[16,20], index: 2, kind: input, shape index: {}]   ;;  %s1249_s3 = inlined_call_operand.hbm [shape: bf16[20,16], index: 3, kind: input, shape index: {}]   ;;  %s1250_s4 = inlined_call_operand.hbm [shape: f32[32,16], index: 4, kind: output, shape index: {}]  }
   0x1   :  { %10 = vsyncpa [#allocation6], 0 }
   0x2   :  { %11 = vsyncpa [#allocation9], 0 }
   0x3   :  { %12 = vsyncpa [#allocation4], 0  ;;  %s999_s15 = smov [#allocation5]   ;;  %s1000_s17 = smov [#allocation2]  }
   0x4   :  { %s30_s16 = sshll.u32 %s999_s15, 4  ;;  %s18_s18 = sshll.u32 %s1000_s17, 4  ;;  %s31_s16 = int_to_ptr.vmem [resolvable:$true] %s30_s16  ;;  %s1034_s18 = int_to_ptr.vmem [resolvable:$true] %s18_s18 }
   0x5   :  { %s881_s21 = scalar_lea.hbm %s1247_s1, 256 }
   0x6   :  { %p882_p0 = scmp.ne.s32.totalorder %s1247_s1, %s881_s21  ;;  %p885_p1 = scmp.lt.u32.totalorder %s881_s21, %s1247_s1 }
   0x8   :  { %p887_p2 = pnand %p885_p1, %p882_p0 }
   0xa   :  { %890 = shalt.err (!%p887_p2)
}
   0xb   :  { %s891_s26 = scalar_lea.vmem %s31_s16, 256  ;;  %p896_p4 = scmp.lt.s32.totalorder %s31_s16, %s31_s16 }
   0xc   :  { %p892_p3 = scmp.ne.s32.totalorder %s31_s16, %s891_s26  ;;  %p897_p5 = scmp.lt.s32.totalorder %s891_s26, %s891_s26 }
   0xe   :  { %p898_p6 = por %p897_p5, %p896_p4 }
  0x10   :  { %p899_p7 = pnand %p898_p6, %p892_p3 }
  0x12   :  { %902 = shalt.err (!%p899_p7)
}
  0x13   :  { %s1001_s27 = smov 64   ;;  %s1002_s28 = smov 4  }
  0x14   :  { %36 = dma.hbm_to_vmem [thread:$0]  %s1247_s1, 256, %s31_s16, [#allocation6], %s1001_s27, %s1001_s27, %s1002_s28  }
  0x15   :  { %s903_s7 = scalar_lea.hbm %s1246_s0, 1024 }
  0x16   :  { %p904_p8 = scmp.ne.s32.totalorder %s1246_s0, %s903_s7  ;;  %p907_p9 = scmp.lt.u32.totalorder %s903_s7, %s1246_s0 }
  0x18   :  { %p909_p10 = pnand %p907_p9, %p904_p8 }
  0x1a   :  { %912 = shalt.err (!%p909_p10)
}
  0x1b   :  { %s913_s12 = scalar_lea.vmem %s1034_s18, 1024  ;;  %p918_p12 = scmp.lt.s32.totalorder %s1034_s18, %s1034_s18 }
  0x1c   :  { %p914_p11 = scmp.ne.s32.totalorder %s1034_s18, %s913_s12  ;;  %p919_p13 = scmp.lt.s32.totalorder %s913_s12, %s913_s12 }
  0x1e   :  { %p920_p0 = por %p919_p13, %p918_p12 }
  0x20   :  { %p921_p1 = pnand %p920_p0, %p914_p11 }
  0x22   :  { %924 = shalt.err (!%p921_p1)
}
  0x23   :  { %24 = dma.hbm_to_vmem [thread:$0]  %s1246_s0, 1024, %s1034_s18, [#allocation3], %s1001_s27, %s1001_s27, %s1002_s28  }
  0x24   :  { %s1003_s14 = smov [#allocation7]   ;;  %s1004_s16 = smov [#allocation8]  }
  0x25   :  { %s42_s15 = sshll.u32 %s1003_s14, 4  ;;  %s54_s17 = sshll.u32 %s1004_s16, 4  ;;  %s43_s15 = int_to_ptr.vmem [resolvable:$true] %s42_s15  ;;  %s1071_s17 = int_to_ptr.vmem [resolvable:$true] %s54_s17 }
  0x26   :  { %s925_s21 = scalar_lea.hbm %s1248_s2, 128 }
  0x27   :  { %p926_p2 = scmp.ne.s32.totalorder %s1248_s2, %s925_s21  ;;  %p929_p3 = scmp.lt.u32.totalorder %s925_s21, %s1248_s2 }
  0x29   :  { %p931_p4 = pnand %p929_p3, %p926_p2 }
  0x2b   :  { %934 = shalt.err (!%p931_p4)
}
  0x2c   :  { %s935_s0 = scalar_lea.vmem %s43_s15, 128  ;;  %p940_p6 = scmp.lt.s32.totalorder %s43_s15, %s43_s15 }
  0x2d   :  { %p936_p5 = scmp.ne.s32.totalorder %s43_s15, %s935_s0  ;;  %p941_p7 = scmp.lt.s32.totalorder %s935_s0, %s935_s0 }
  0x2f   :  { %p942_p8 = por %p941_p7, %p940_p6 }
  0x31   :  { %p943_p9 = pnand %p942_p8, %p936_p5 }
  0x33   :  { %946 = shalt.err (!%p943_p9)
}
  0x34   :  { %48 = dma.hbm_to_vmem [thread:$0]  %s1248_s2, 128, %s43_s15, [#allocation6], %s1001_s27, %s1001_s27, %s1002_s28  }
  0x35   :  { %s947_s5 = scalar_lea.hbm %s1249_s3, 192 }
  0x36   :  { %p948_p10 = scmp.ne.s32.totalorder %s1249_s3, %s947_s5  ;;  %p951_p11 = scmp.lt.u32.totalorder %s947_s5, %s1249_s3 }
  0x38   :  { %p953_p12 = pnand %p951_p11, %p948_p10 }
  0x3a   :  { %956 = shalt.err (!%p953_p12)
}
  0x3b   :  { %s957_s10 = scalar_lea.vmem %s1071_s17, 192  ;;  %p962_p0 = scmp.lt.s32.totalorder %s1071_s17, %s1071_s17 }
  0x3c   :  { %p958_p13 = scmp.ne.s32.totalorder %s1071_s17, %s957_s10  ;;  %p963_p1 = scmp.lt.s32.totalorder %s957_s10, %s957_s10 }
  0x3e   :  { %p964_p2 = por %p963_p1, %p962_p0 }
  0x40   :  { %p965_p3 = pnand %p964_p2, %p958_p13 }
  0x42   :  { %968 = shalt.err (!%p965_p3)
}
  0x43   :  { %60 = dma.hbm_to_vmem [thread:$0]  %s1249_s3, 192, %s1071_s17, [#allocation9], %s1001_s27, %s1001_s27, %s1002_s28  }
  0x44   :  { %991 = dma.done.wait [#allocation3], 1024  }
  0x45   :  { %992 = vsyncadd [#allocation3], 4294966272 }
  0x46   :  { %993 = dma.done.wait [#allocation6], 384  }
  0x47   :  { %994 = vsyncadd [#allocation6], 4294966912 }
  0x48   :  { %995 = dma.done.wait [#allocation9], 192  }
  0x49   :  { %996 = vsyncadd [#allocation9], 4294967104  ;;  %v1005_v0 = vmov 20   ;;  %v796_v1 = vld [vmem:[#allocation7] sm:$0xff]   ;;  %vm224_vm0 = vcmask 130048   ;;  %v797_v2 = vld [vmem:[#allocation5] sm:$0xff]  }
  0x4a   :  { %795 = vset.pattern.permute.xlu1 %v1005_v0  ;;  %794 = vset.pattern.permute.xlu0 %v1005_v0  ;;  %v798_v3 = vld [vmem:[#allocation5 + $0x8] sm:$0xff]   ;;  %v1109_v4 = vld [vmem:[#allocation2 + $0x18] sm:$0xff]   ;;  %v1111_v5 = vld [vmem:[#allocation2 + $0x10] sm:$0xff]   ;;  %vm461_vm1 = vcmask 1041408   ;;  %vm436_vm2 = vcmask 162816   ;;  %s1006_s3 = smov [#allocation10]  }
  0x4b   :  { %752 = vmatprep.subr.bf16.mxu0 %v796_v1  ;;  %754 = vmatprep.mubr.msk.bf16.mxu0 %vm224_vm0, %v797_v2  ;;  %v1113_v6 = vld [vmem:[#allocation2 + $0x20] sm:$0xff]   ;;  %v714_v7 = vunpack.c.l.bf16 %v1109_v4  ;;  %v715_v8 = vunpack.c.h.bf16 %v1109_v4  ;;  %v710_v9 = vunpack.c.l.bf16 %v1111_v5  ;;  %v711_v10 = vunpack.c.h.bf16 %v1111_v5  ;;  %v1119_v11 = vld [vmem:[#allocation2 + $0x28] sm:$0xff]   ;;  %v1153_v31 = vld [vmem:[#allocation2 + $0x30] sm:$0xff]   ;;  %s651_s27 = sshll.u32 %s1006_s3, 4  ;;  %s652_s27 = int_to_ptr.vmem [resolvable:$true] %s651_s27 }
  0x4c   :  { %753 = vmatpush3.bf16.msra.mxu0 %v796_v1  ;;  %v719_v12 = vunpack.c.h.bf16 %v1113_v6  ;;  %v718_v13 = vunpack.c.l.bf16 %v1113_v6  ;;  %v1123_v14 = vld [vmem:[#allocation2] sm:$0xff]   ;;  %v723_v18 = vunpack.c.h.bf16 %v1119_v11  ;;  %v722_v20 = vunpack.c.l.bf16 %v1119_v11  ;;  %v1139_v23 = vld [vmem:[#allocation2 + $0x8] sm:$0xff]   ;;  %v1163_v49 = vld [vmem:[#allocation2 + $0x38] sm:$0xff]   ;;  %s969_s28 = scalar_lea.vmem %s652_s27, 512  ;;  %p974_p5 = scmp.lt.s32.totalorder %s652_s27, %s652_s27 }
  0x4d   :  { %v671_v15 = vmul.f32 -1.442695, %v714_v7  ;;  %v672_v16 = vmul.f32 -1.442695, %v715_v8  ;;  %v669_v17 = vmul.f32 -1.442695, %v710_v9  ;;  %v703_v22 = vunpack.c.h.bf16 %v1123_v14  ;;  %p970_p4 = scmp.ne.s32.totalorder %s652_s27, %s969_s28  ;;  %p975_p6 = scmp.lt.s32.totalorder %s969_s28, %s969_s28 }
  0x4e   :  { %v670_v19 = vmul.f32 -1.442695, %v711_v10  ;;  %v674_v21 = vmul.f32 -1.442695, %v719_v12  ;;  %v673_v24 = vmul.f32 -1.442695, %v718_v13  ;;  %v702_v27 = vunpack.c.l.bf16 %v1123_v14 }
  0x4f   :  { %755 = vmatmul.mubr.msk.bf16.vlgmr.msra.gmra.mrb[0].mxu0 %vm224_vm0, %v798_v3  ;;  %801 = vpow2.f32 %v671_v15  ;;  %v676_v25 = vmul.f32 -1.442695, %v723_v18  ;;  %v675_v26 = vmul.f32 -1.442695, %v722_v20  ;;  %v666_v28 = vmul.f32 -1.442695, %v703_v22  ;;  %p976_p7 = por %p975_p6, %p974_p5 }
  0x50   :  { %803 = vpow2.f32 %v672_v16  ;;  %v707_v29 = vunpack.c.h.bf16 %v1139_v23  ;;  %v665_v30 = vmul.f32 -1.442695, %v702_v27  ;;  %v706_v33 = vunpack.c.l.bf16 %v1139_v23 }
  0x51   :  { %805 = vpow2.f32 %v669_v17  ;;  %v727_v35 = vunpack.c.h.bf16 %v1153_v31  ;;  %v726_v53 = vunpack.c.l.bf16 %v1153_v31  ;;  %v731_v55 = vunpack.c.h.bf16 %v1163_v49  ;;  %p977_p8 = pnand %p976_p7, %p970_p4 }
  0x52   :  { %807 = vpow2.f32 %v670_v19  ;;  %v668_v32 = vmul.f32 -1.442695, %v707_v29  ;;  %v667_v40 = vmul.f32 -1.442695, %v706_v33  ;;  %v730_v57 = vunpack.c.l.bf16 %v1163_v49 }
  0x53   :  { %809 = vpow2.f32 %v674_v21  ;;  %v678_v45 = vmul.f32 -1.442695, %v727_v35  ;;  %v677_v61 = vmul.f32 -1.442695, %v726_v53  ;;  %v680_v63 = vmul.f32 -1.442695, %v731_v55 }
  0x54   :  { %811 = vpow2.f32 %v673_v24  ;;  %v679_v1 = vmul.f32 -1.442695, %v730_v57 }
  0x55   :  { %813 = vpow2.f32 %v676_v25 }
  0x56   :  { %815 = vpow2.f32 %v675_v26 }
  0x57   :  { %817 = vpow2.f32 %v666_v28 }
  0x58   :  { %819 = vpow2.f32 %v665_v30 }
  0x59   :  { %v802_v34 = vpop.eup %801  ;;  %821 = vpow2.f32 %v668_v32 }
  0x5a   :  { %v804_v36 = vpop.eup %803  ;;  %v160_v37 = vadd.f32 1.0, %v802_v34 }
  0x5b   :  { %v806_v38 = vpop.eup %805  ;;  %v161_v39 = vadd.f32 1.0, %v804_v36 }
  0x5c   :  { %v808_v41 = vpop.eup %807  ;;  %823 = vrcp.f32 %v160_v37  ;;  %v158_v42 = vadd.f32 1.0, %v806_v38 }
  0x5d   :  { %v810_v43 = vpop.eup %809  ;;  %825 = vrcp.f32 %v161_v39  ;;  %v159_v44 = vadd.f32 1.0, %v808_v41 }
  0x5e   :  { %v812_v46 = vpop.eup %811  ;;  %827 = vrcp.f32 %v158_v42  ;;  %v163_v47 = vadd.f32 1.0, %v810_v43 }
  0x5f   :  { %v814_v48 = vpop.eup %813  ;;  %829 = vpow2.f32 %v667_v40  ;;  %v162_v51 = vadd.f32 1.0, %v812_v46 }
  0x60   :  { %v816_v50 = vpop.eup %815  ;;  %831 = vrcp.f32 %v159_v44  ;;  %v165_v54 = vadd.f32 1.0, %v814_v48  ;;  %v799_v48 = vld [vmem:[#allocation8] sm:$0xff]  }
  0x61   :  { %v818_v52 = vpop.eup %817  ;;  %833 = vpow2.f32 %v678_v45  ;;  %v164_v56 = vadd.f32 1.0, %v816_v50  ;;  %758 = vmatprep.subr.bf16.mxu0 %v799_v48  ;;  %778 = vmatprep.subr.bf16.mxu1 %v799_v48  ;;  %v800_v50 = vld [vmem:[#allocation8 + $0x8] ss:$0 sps:$4 sm:$0x33]  }
  0x62   :  { %835 = vrcp.f32 %v163_v47  ;;  %v820_v58 = vpop.eup %819  ;;  %v155_v59 = vadd.f32 1.0, %v818_v52  ;;  %759 = vmatpush3.bf16.msra.mxu0 %v799_v48  ;;  %780 = vmatpush3.bf16.msra.mxu1 %v799_v48 }
  0x63   :  { %837 = vrcp.f32 %v162_v51  ;;  %v822_v60 = vpop.eup %821  ;;  %v154_v3 = vadd.f32 1.0, %v820_v58  ;;  %782 = vmatprep.subr.msk.bf16.mxu0 %vm461_vm1, %v800_v50  ;;  %783 = vmatprep.subr.msk.bf16.mxu1 %vm461_vm1, %v800_v50  ;;  %v463_v51 = vsel %vm461_vm1, %v800_v50, 0 }
  0x64   :  { %839 = vrcp.f32 %v165_v54  ;;  %v157_v17 = vadd.f32 1.0, %v822_v60 }
  0x65   :  { %841 = vrcp.f32 %v164_v56 }
  0x66   :  { %v824_v62 = vpop.eup %823  ;;  %843 = vrcp.f32 %v155_v59  ;;  %761 = vmatpush3.bf16.msra.mxu0 %v463_v51  ;;  %781 = vmatpush3.bf16.msra.mxu1 %v463_v51 }
  0x67   :  { %v826_v0 = vpop.eup %825  ;;  %336 = vperm.xlu1 %795, %v824_v62   ;;  %845 = vpow2.f32 %v677_v61 }
  0x68   :  { %v828_v2 = vpop.eup %827  ;;  %847 = vpow2.f32 %v680_v63 }
  0x69   :  { %v830_v15 = vpop.eup %829  ;;  %326 = vperm.xlu0 %794, %v828_v2   ;;  %849 = vpow2.f32 %v679_v1 }
  0x6a   :  { %v832_v16 = vpop.eup %831  ;;  %851 = vrcp.f32 %v154_v3  ;;  %v156_v24 = vadd.f32 1.0, %v830_v15 }
  0x6b   :  { %v834_v19 = vpop.eup %833  ;;  %341 = vperm.xlu1 %795, %v826_v0   ;;  %853 = vrcp.f32 %v157_v17 }
  0x6c   :  { %v836_v21 = vpop.eup %835  ;;  %v167_v26 = vadd.f32 1.0, %v834_v19  ;;  %855 = vrcp.f32 %v156_v24 }
  0x6d   :  { %331 = vperm.xlu0 %794, %v832_v16   ;;  %v838_v25 = vpop.eup %837 }
  0x6e   :  { %v840_v28 = vpop.eup %839  ;;  %857 = vrcp.f32 %v167_v26 }
  0x6f   :  { %351 = vperm.xlu1 %795, %v836_v21   ;;  %v842_v30 = vpop.eup %841 }
  0x70   :  { %v844_v32 = vpop.eup %843 }
  0x71   :  { %346 = vperm.xlu0 %794, %v838_v25   ;;  %v846_v34 = vpop.eup %845 }
  0x72   :  { %v848_v36 = vpop.eup %847  ;;  %v166_v37 = vadd.f32 1.0, %v846_v34 }
  0x73   :  { %361 = vperm.xlu1 %795, %v840_v28   ;;  %v850_v38 = vpop.eup %849  ;;  %v169_v39 = vadd.f32 1.0, %v848_v36 }
  0x74   :  { %v852_v40 = vpop.eup %851  ;;  %859 = vrcp.f32 %v166_v37  ;;  %v168_v41 = vadd.f32 1.0, %v850_v38 }
  0x75   :  { %356 = vperm.xlu0 %794, %v842_v30   ;;  %861 = vrcp.f32 %v169_v39  ;;  %v854_v42 = vpop.eup %853 }
  0x76   :  { %863 = vrcp.f32 %v168_v41  ;;  %v856_v43 = vpop.eup %855 }
  0x77   :  { %311 = vperm.xlu1 %795, %v844_v32  }
  0x78   :  { %v858_v44 = vpop.eup %857 }
  0x79   :  { %306 = vperm.xlu0 %794, %v852_v40  }
  0x7b   :  { %321 = vperm.xlu1 %795, %v854_v42  }
  0x7d   :  { %316 = vperm.xlu0 %794, %v856_v43  }
  0x7e   :  { %v860_v45 = vpop.eup %859 }
  0x7f   :  { %371 = vperm.xlu1 %795, %v858_v44   ;;  %v862_v46 = vpop.eup %861 }
  0x80   :  { %v864_v47 = vpop.eup %863 }
  0x81   :  { %366 = vperm.xlu0 %794, %v860_v45  }
  0x83   :  { %381 = vperm.xlu1 %795, %v862_v46  }
  0x85   :  { %376 = vperm.xlu0 %794, %v864_v47  }
  0xe6   :  { %v337_v54 = vpop.permute.xlu1 %336 }
  0xe7   :  { %v390_v42 = vmul.f32 %v714_v7, %v337_v54 }
  0xe8   :  { %v327_v52 = vpop.permute.xlu0 %326 }
  0xe9   :  { %v388_v43 = vmul.f32 %v710_v9, %v327_v52 }
  0xea   :  { %v342_v58 = vpop.permute.xlu1 %341 }
  0xeb   :  { %v391_v44 = vmul.f32 %v715_v8, %v342_v58 }
  0xec   :  { %v332_v56 = vpop.permute.xlu0 %331 }
  0xed   :  { %v389_v45 = vmul.f32 %v711_v10, %v332_v56 }
  0xee   :  { %v352_v60 = vpop.permute.xlu1 %351 }
  0xef   :  { %v393_v47 = vmul.f32 %v719_v12, %v352_v60 }
  0xf0   :  { %v347_v59 = vpop.permute.xlu0 %346 }
  0xf1   :  { %v392_v48 = vmul.f32 %v718_v13, %v347_v59 }
  0xf2   :  { %v362_v62 = vpop.permute.xlu1 %361 }
  0xf3   :  { %v395_v7 = vmul.f32 %v723_v18, %v362_v62 }
  0xf4   :  { %v357_v61 = vpop.permute.xlu0 %356 }
  0xf5   :  { %v394_v9 = vmul.f32 %v722_v20, %v357_v61 }
  0xf6   :  { %v312_v21 = vpop.permute.xlu1 %311 }
  0xf7   :  { %v385_v4 = vmul.f32 %v703_v22, %v312_v21 }
  0xf8   :  { %v307_v19 = vpop.permute.xlu0 %306 }
  0xf9   :  { %v384_v5 = vmul.f32 %v702_v27, %v307_v19 }
  0xfa   :  { %v322_v25 = vpop.permute.xlu1 %321 }
  0xfb   :  { %v387_v12 = vmul.f32 %v707_v29, %v322_v25 }
  0xfc   :  { %v317_v24 = vpop.permute.xlu0 %316 }
  0xfd   :  { %v386_v8 = vmul.f32 %v706_v33, %v317_v24 }
  0xfe   :  { %v372_v40 = vpop.permute.xlu1 %371 }
  0xff   :  { %v397_v11 = vmul.f32 %v727_v35, %v372_v40 }
 0x100   :  { %v367_v38 = vpop.permute.xlu0 %366 }
 0x101   :  { %v396_v13 = vmul.f32 %v726_v53, %v367_v38 }
 0x102   :  { %v382_v46 = vpop.permute.xlu1 %381 }
 0x103   :  { %v399_v14 = vmul.f32 %v731_v55, %v382_v46 }
 0x104   :  { %v377_v41 = vpop.permute.xlu0 %376 }
 0x105   :  { %v398_v10 = vmul.f32 %v730_v57, %v377_v41 }
 0x122   :  { %v756_v63 = vpop.f32.mrb[0].mxu0 }
 0x123   :  { %v688_v0 = vmul.f32 -1.442695, %v756_v63  ;;  %v265_v1 = vpop.f32.mrb[1].mxu0 }
 0x124   :  { %v686_v2 = vmul.f32 -1.442695, %v265_v1  ;;  %v757_v3 = vpop.f32.mrb[2].mxu0 }
 0x125   :  { %865 = vpow2.f32 %v688_v0  ;;  %v689_v15 = vmul.f32 -1.442695, %v757_v3  ;;  %v268_v16 = vpop.f32.mrb[3].mxu0 }
 0x126   :  { %867 = vpow2.f32 %v686_v2  ;;  %v687_v17 = vmul.f32 -1.442695, %v268_v16 }
 0x127   :  { %869 = vpow2.f32 %v689_v15 }
 0x128   :  { %871 = vpow2.f32 %v687_v17 }
 0x12f   :  { %v866_v26 = vpop.eup %865 }
 0x130   :  { %v868_v28 = vpop.eup %867  ;;  %v294_v30 = vadd.f32 1.0, %v866_v26 }
 0x131   :  { %v870_v32 = vpop.eup %869  ;;  %v292_v34 = vadd.f32 1.0, %v868_v28 }
 0x132   :  { %v872_v36 = vpop.eup %871  ;;  %873 = vrcp.f32 %v294_v30  ;;  %v295_v37 = vadd.f32 1.0, %v870_v32 }
 0x133   :  { %875 = vrcp.f32 %v292_v34  ;;  %v293_v39 = vadd.f32 1.0, %v872_v36 }
 0x134   :  { %877 = vrcp.f32 %v295_v37 }
 0x135   :  { %879 = vrcp.f32 %v293_v39 }
 0x13c   :  { %v874_v6 = vpop.eup %873 }
 0x13d   :  { %v876_v18 = vpop.eup %875  ;;  %v410_v20 = vadd.f32 %v874_v6, %v394_v9  ;;  %v402_v22 = vadd.f32 %v874_v6, %v386_v8  ;;  %v414_v27 = vadd.f32 %v874_v6, %v398_v10  ;;  %v406_v33 = vadd.f32 %v874_v6, %v390_v42 }
 0x13e   :  { %v878_v50 = vpop.eup %877  ;;  %v400_v57 = vadd.f32 %v876_v18, %v384_v5  ;;  %v412_v51 = vadd.f32 %v876_v18, %v396_v13  ;;  %v404_v52 = vadd.f32 %v876_v18, %v388_v43  ;;  %v408_v23 = vadd.f32 %v876_v18, %v392_v48 }
 0x13f   :  { %v880_v29 = vpop.eup %879  ;;  %v403_v54 = vadd.f32 %v878_v50, %v387_v12  ;;  %v415_v56 = vadd.f32 %v878_v50, %v399_v14  ;;  %v407_v35 = vadd.f32 %v878_v50, %v391_v44  ;;  %v411_v58 = vadd.f32 %v878_v50, %v395_v7 }
 0x140   :  { %v401_v31 = vadd.f32 %v880_v29, %v385_v4  ;;  %v413_v53 = vadd.f32 %v880_v29, %v397_v11  ;;  %v405_v59 = vadd.f32 %v880_v29, %v389_v45  ;;  %v409_v49 = vadd.f32 %v880_v29, %v393_v47 }
 0x141   :  { %v417_v55 = vpack.c.bf16 %v403_v54, %v402_v22  ;;  %v423_v60 = vpack.c.bf16 %v415_v56, %v414_v27  ;;  %v419_v61 = vpack.c.bf16 %v407_v35, %v406_v33  ;;  %v421_v62 = vpack.c.bf16 %v411_v58, %v410_v20 }
 0x142   :  { %v416_v63 = vpack.c.bf16 %v401_v31, %v400_v57  ;;  %v422_v0 = vpack.c.bf16 %v413_v53, %v412_v51  ;;  %v418_v1 = vpack.c.bf16 %v405_v59, %v404_v52  ;;  %v420_v2 = vpack.c.bf16 %v409_v49, %v408_v23 }
 0x144   :  { %762 = vmatprep.mubr.msk.bf16.mxu0 %vm436_vm2, %v416_v63  ;;  %766 = vmatprep.mubr.msk.bf16.mxu1 %vm436_vm2, %v418_v1 }
 0x145   :  { %763 = vmatmul.mubr.msk.bf16.vlgmr.msra.gmra.mrb[4].mxu0 %vm436_vm2, %v417_v55  ;;  %767 = vmatmul.mubr.msk.bf16.vlgmr.msra.gmra.mrb[0].mxu1 %vm436_vm2, %v419_v61 }
 0x146   :  { %770 = vmatprep.mubr.msk.bf16.mxu1 %vm436_vm2, %v420_v2 }
 0x14d   :  { %771 = vmatmul.mubr.msk.bf16.gmra.mrb[4].mxu1 %vm436_vm2, %v421_v62 }
 0x14e   :  { %774 = vmatprep.mubr.msk.bf16.mxu1 %vm436_vm2, %v422_v0 }
 0x155   :  { %775 = vmatmul.mubr.msk.bf16.gmra.mrb[8].mxu1 %vm436_vm2, %v423_v60 }
 0x218   :  { %v764_v3 = vpop.f32.mrb[4].mxu0  ;;  %v768_v15 = vpop.f32.mrb[0].mxu1 }
 0x219   :  { %vm564_vm3 = vcmp.ge.f32.partialorder %v764_v3, 0.0  ;;  %v580_v16 = vmul.f32 0.02, %v764_v3  ;;  %vm568_vm4 = vcmp.ge.f32.partialorder %v768_v15, 0.0  ;;  %v584_v17 = vmul.f32 0.02, %v768_v15 }
 0x21a   :  { %v499_v19 = vpop.f32.mrb[5].mxu0  ;;  %v515_v21 = vpop.f32.mrb[1].mxu1 }
 0x21b   :  { %v596_v24 = vsel %vm564_vm3, %v764_v3, %v580_v16  ;;  %v600_v25 = vsel %vm568_vm4, %v768_v15, %v584_v17  ;;  %vm562_vm5 = vcmp.ge.f32.partialorder %v499_v19, 0.0  ;;  %v578_v26 = vmul.f32 0.02, %v499_v19  ;;  %v765_v28 = vpop.f32.mrb[6].mxu0  ;;  %v769_v30 = vpop.f32.mrb[2].mxu1 }
 0x21c   :  { %v624_v32 = vsel %vm224_vm0, %v596_v24, 0.0  ;;  %v625_v34 = vsel %vm224_vm0, %v600_v25, 0.0  ;;  %vm566_vm6 = vcmp.ge.f32.partialorder %v515_v21, 0.0  ;;  %v582_v36 = vmul.f32 0.02, %v515_v21  ;;  %v502_v37 = vpop.f32.mrb[7].mxu0 }
 0x21d   :  { %v626_v38 = vadd.f32 %v625_v34, %v624_v32  ;;  %v594_v39 = vsel %vm562_vm5, %v499_v19, %v578_v26  ;;  %vm565_vm7 = vcmp.ge.f32.partialorder %v765_v28, 0.0  ;;  %v581_v40 = vmul.f32 0.02, %v765_v28  ;;  %v518_v41 = vpop.f32.mrb[3].mxu1 }
 0x21e   :  { %v610_v42 = vsel %vm224_vm0, %v594_v39, 0.0  ;;  %v598_v43 = vsel %vm566_vm6, %v515_v21, %v582_v36  ;;  %vm569_vm8 = vcmp.ge.f32.partialorder %v769_v30, 0.0  ;;  %v585_v44 = vmul.f32 0.02, %v769_v30 }
 0x21f   :  { %v611_v45 = vsel %vm224_vm0, %v598_v43, 0.0  ;;  %v597_v46 = vsel %vm565_vm7, %v765_v28, %v581_v40  ;;  %vm563_vm9 = vcmp.ge.f32.partialorder %v502_v37, 0.0  ;;  %v579_v47 = vmul.f32 0.02, %v502_v37 }
 0x220   :  { %v612_v48 = vadd.f32 %v611_v45, %v610_v42  ;;  %v631_v7 = vsel %vm224_vm0, %v597_v46, 0.0  ;;  %v601_v9 = vsel %vm569_vm8, %v769_v30, %v585_v44  ;;  %vm567_vm10 = vcmp.ge.f32.partialorder %v518_v41, 0.0  ;;  %v772_v4 = vpop.f32.mrb[4].mxu1 }
 0x221   :  { %v632_v5 = vsel %vm224_vm0, %v601_v9, 0.0  ;;  %v595_v8 = vsel %vm563_vm9, %v502_v37, %v579_v47  ;;  %v583_v10 = vmul.f32 0.02, %v518_v41  ;;  %vm572_vm11 = vcmp.ge.f32.partialorder %v772_v4, 0.0  ;;  %v531_v6 = vpop.f32.mrb[5].mxu1 }
 0x222   :  { %v633_v12 = vadd.f32 %v632_v5, %v631_v7  ;;  %v617_v11 = vsel %vm224_vm0, %v595_v8, 0.0  ;;  %v588_v13 = vmul.f32 0.02, %v772_v4  ;;  %vm570_vm12 = vcmp.ge.f32.partialorder %v531_v6, 0.0  ;;  %v773_v14 = vpop.f32.mrb[6].mxu1 }
 0x223   :  { %v599_v18 = vsel %vm567_vm10, %v518_v41, %v583_v10  ;;  %v586_v20 = vmul.f32 0.02, %v531_v6  ;;  %vm573_vm13 = vcmp.ge.f32.partialorder %v773_v14, 0.0  ;;  %v589_v22 = vmul.f32 0.02, %v773_v14  ;;  %v534_v27 = vpop.f32.mrb[7].mxu1 }
 0x224   :  { %v618_v33 = vsel %vm224_vm0, %v599_v18, 0.0  ;;  %v604_v50 = vsel %vm572_vm11, %v772_v4, %v588_v13  ;;  %vm571_vm14 = vcmp.ge.f32.partialorder %v534_v27, 0.0  ;;  %v587_v57 = vmul.f32 0.02, %v534_v27 }
 0x225   :  { %v619_v51 = vadd.f32 %v618_v33, %v617_v11  ;;  %v627_v52 = vsel %vm224_vm0, %v604_v50, 0.0  ;;  %v602_v23 = vsel %vm570_vm12, %v531_v6, %v586_v20  ;;  %v605_v29 = vsel %vm573_vm13, %v773_v14, %v589_v22 }
 0x226   :  { %v628_v54 = vadd.f32 %v627_v52, %v626_v38  ;;  %v613_v56 = vsel %vm224_vm0, %v602_v23, 0.0  ;;  %v634_v35 = vsel %vm224_vm0, %v605_v29, 0.0  ;;  %v603_v58 = vsel %vm571_vm14, %v534_v27, %v587_v57 }
 0x227   :  { %v614_v31 = vadd.f32 %v613_v56, %v612_v48  ;;  %v635_v53 = vadd.f32 %v634_v35, %v633_v12  ;;  %v620_v59 = vsel %vm224_vm0, %v603_v58, 0.0 }
 0x228   :  { %v621_v49 = vadd.f32 %v620_v59, %v619_v51  ;;  %v776_v55 = vpop.f32.mrb[8].mxu1 }
 0x229   :  { %vm576_vm15 = vcmp.ge.f32.partialorder %v776_v55, 0.0  ;;  %v592_v60 = vmul.f32 0.02, %v776_v55  ;;  %v547_v61 = vpop.f32.mrb[9].mxu1 }
 0x22a   :  { %vm574_vm1 = vcmp.ge.f32.partialorder %v547_v61, 0.0  ;;  %v590_v62 = vmul.f32 0.02, %v547_v61  ;;  %v777_v63 = vpop.f32.mrb[10].mxu1 }
 0x22b   :  { %v608_v0 = vsel %vm576_vm15, %v776_v55, %v592_v60  ;;  %vm577_vm2 = vcmp.ge.f32.partialorder %v777_v63, 0.0  ;;  %v593_v1 = vmul.f32 0.02, %v777_v63  ;;  %v550_v2 = vpop.f32.mrb[11].mxu1 }
 0x22c   :  { %v629_v3 = vsel %vm224_vm0, %v608_v0, 0.0  ;;  %v606_v15 = vsel %vm574_vm1, %v547_v61, %v590_v62  ;;  %vm575_vm3 = vcmp.ge.f32.partialorder %v550_v2, 0.0  ;;  %v591_v16 = vmul.f32 0.02, %v550_v2 }
 0x22d   :  { %v630_v17 = vadd.f32 %v629_v3, %v628_v54  ;;  %v615_v19 = vsel %vm224_vm0, %v606_v15, 0.0  ;;  %v609_v21 = vsel %vm577_vm2, %v777_v63, %v593_v1 }
 0x22e   :  { %v616_v24 = vadd.f32 %v615_v19, %v614_v31  ;;  %v636_v25 = vsel %vm224_vm0, %v609_v21, 0.0  ;;  %v607_v26 = vsel %vm575_vm3, %v550_v2, %v591_v16 }
 0x22f   :  { %v640_v28 = vmul.f32 0.25, %v630_v17  ;;  %v637_v30 = vadd.f32 %v636_v25, %v635_v53  ;;  %v622_v32 = vsel %vm224_vm0, %v607_v26, 0.0 }
 0x230   :  { %v638_v34 = vmul.f32 0.25, %v616_v24  ;;  %v623_v36 = vadd.f32 %v622_v32, %v621_v49 }
 0x231   :  { %644 = vst.msk [vmem:[#allocation10 + $0x10] sm:$0xff] %vm224_vm0, %v640_v28  ;;  %v641_v37 = vmul.f32 0.25, %v637_v30 }
 0x232   :  { %642 = vst.msk [vmem:[#allocation10] sm:$0xff] %vm224_vm0, %v638_v34  ;;  %v639_v38 = vmul.f32 0.25, %v623_v36 }
 0x233   :  { %645 = vst.msk [vmem:[#allocation10 + $0x18] sm:$0xff] %vm224_vm0, %v641_v37 }
 0x234   :  { %643 = vst.msk [vmem:[#allocation10 + $0x8] sm:$0xff] %vm224_vm0, %v639_v38 }
 0x235   :  { %980 = shalt.err (!%p977_p8)
}
 0x236   :  { %s981_s13 = scalar_lea.hbm %s1250_s4, 512 }
 0x237   :  { %p982_p9 = scmp.ne.s32.totalorder %s1250_s4, %s981_s13  ;;  %p985_p10 = scmp.lt.u32.totalorder %s981_s13, %s1250_s4 }
 0x239   :  { %p987_p11 = pnand %p985_p10, %p982_p9 }
 0x23b   :  { %990 = shalt.err (!%p987_p11)
}
 0x23c   :  { %s1007_s19 = smov 128   ;;  %s1008_s20 = smov 8  }
 0x23d   :  { %657 = dma.vmem_to_hbm [thread:$0]  %s652_s27, 512, %s1250_s4, [#allocation4], %s1007_s19, %s1007_s19, %s1008_s20  }
 0x23e   :  { %997 = dma.done.wait [#allocation4], 512  }
 0x23f   :  { %998 = vsyncadd [#allocation4], 4294966784 }
 0x240   :  { %661 = vsyncpa [#allocation3], 1 }
 0x241   :  { %662 = vsyncpa [#allocation6], 1 }
 0x242   :  { %663 = vsyncpa [#allocation9], 1 }
 0x243   :  { %664 = vsyncpa [#allocation4], 1 }

// kernel: _lambda_.5
= control target key start
LH: loop header
LB: loop body
LE: loop exit
PB: predicated region body
PF: predicated region fallthrough
CT: control target
= control target key end

     0   :  { %vm83_vm0 = vcmask 261120   ;;  %v1375_v4 = vmov 0.0|0.0   ;;  %vm1376_vm5 = vmmov 0   ;;  %v1377_v51 = vmov 0.0   ;;  %s1378_s27 = smov 32   ;;  %s1681_s2 = inlined_call_operand.vmem [shape: bf16[32,32], index: 2, kind: input, shape index: {}]   ;;  %s1682_s0 = inlined_call_operand.vmem [shape: bf16[2,16,32], index: 0, kind: input, shape index: {}]   ;;  %s1683_s3 = inlined_call_operand.vmem [shape: f32[64,32], index: 3, kind: input, shape index: {}]   ;;  %s1684_s8 = inlined_call_operand.vmem [shape: f32[33,32], index: 8, kind: input, shape index: {}]   ;;  %s1685_s1 = inlined_call_operand.vmem [shape: f32[2,1], index: 1, kind: input, shape index: {}]   ;;  %s1686_s5 = inlined_call_operand.vmem [shape: f32[33,32], index: 5, kind: input, shape index: {}]   ;;  %s1687_s4 = inlined_call_operand.vmem [shape: f32[1,32], index: 4, kind: input, shape index: {}]   ;;  %s1688_s6 = inlined_call_operand.vmem [shape: f32[32,32], index: 6, kind: input, shape index: {}]   ;;  %s1689_s7 = inlined_call_operand.vmem [shape: f32[32,32], index: 7, kind: input, shape index: {}]   ;;  %s1690_s12 = inlined_call_operand.vmem [shape: f32[32,16], index: 12, kind: input, shape index: {}]   ;;  %s1691_s9 = inlined_call_operand.vmem [shape: f32[32,16], index: 9, kind: input, shape index: {}]   ;;  %s1692_s10 = inlined_call_operand.vmem [shape: f32[16,16], index: 10, kind: input, shape index: {}]   ;;  %s1693_s11 = inlined_call_operand.vmem [shape: f32[16,16], index: 11, kind: input, shape index: {}]   ;;  %s1694_s13 = inlined_call_operand.vmem [shape: f32[16,1], index: 13, kind: input, shape index: {}]   ;;  %s1695_s14 = inlined_call_operand.<no memory space> [shape: f32[1,1], index: 14, kind: input, shape index: {}]   ;;  %s1696_s15 = inlined_call_operand.vmem [shape: f32[2,1], index: 15, kind: output, shape index: {}]  }
   0x1   :  { %v1359_v0 = vld [vmem:[%s1681_s2] sm:$0xff]   ;;  %v1360_v1 = vld [vmem:[%s1681_s2 + $0x8] sm:$0xff]   ;;  %1298 = vmatprep.subr.bf16.mxu1 %v1375_v4  ;;  %v204_v7 = vld [vmem:[%s1683_s3 + $0x10] sm:$0xff]  ;;  %1204 = vmatprep.mubr.msk.f32.mxu1 %vm1376_vm5, %v1377_v51  ;;  %vm192_vm6 = vcmask 1041409   ;;  %vm217_vm7 = vcmask 523264   ;;  %vm309_vm8 = vcmask 1040384  }
   0x2   :  { %1180 = vmatprep.subr.bf16.mxu0 %v1359_v0  ;;  %v1361_v2 = vld [vmem:[%s1682_s0] sm:$0xff]   ;;  %v1362_v3 = vld [vmem:[%s1682_s0 + $0x8] sm:$0xff]   ;;  %v205_v9 = vld [vmem:[%s1683_s3 + $0x18] sm:$0xff]  ;;  %vm305_vm10 = vcmask 269312   ;;  %vm461_vm11 = vcmask 254976   ;;  %vm817_vm15 = vcmask 123904  }
   0x3   :  { %1181 = vmatpush3.bf16.msra.mxu0 %v1359_v0  ;;  %1184 = vmatprep.mubr.msk.bf16.mxu0 %vm83_vm0, %v1361_v2  ;;  %v202_v5 = vld [vmem:[%s1683_s3] sm:$0xff]  ;;  %v203_v6 = vld [vmem:[%s1683_s3 + $0x8] sm:$0xff]  ;;  %v1302_v10 = vpack.c.bf16 %v205_v9, %v204_v7  ;;  %v208_v14 = vld [vmem:[%s1683_s3 + $0x30] sm:$0xff] }
   0x4   :  { %1182 = vmatprep.subr.bf16.mxu0 %v1360_v1  ;;  %v1299_v8 = vpack.c.bf16 %v203_v6, %v202_v5  ;;  %v206_v11 = vld [vmem:[%s1683_s3 + $0x20] sm:$0xff]  ;;  %v207_v12 = vld [vmem:[%s1683_s3 + $0x28] sm:$0xff]  ;;  %v209_v15 = vld [vmem:[%s1683_s3 + $0x38] sm:$0xff] }
   0x5   :  { %v1305_v13 = vpack.c.bf16 %v207_v12, %v206_v11  ;;  %v1308_v16 = vpack.c.bf16 %v209_v15, %v208_v14  ;;  %v300_v56 = vld [vmem:[%s1684_s8] sm:$0xff]  ;;  %v301_v57 = vld [vmem:[%s1684_s8 + $0x8] sm:$0xff] }
   0x6   :  { %1300 = vmatpush3.bf16.msra.mxu1 %v1299_v8  ;;  %v1311_v58 = vpack.c.bf16 %v301_v57, %v300_v56  ;;  %v383_v11 = vld [vmem:[%s1686_s5] sm:$0xff]  ;;  %v384_v12 = vld [vmem:[%s1686_s5 + $0x8] sm:$0xff] }
   0x7   :  { %1183 = vmatpush3.bf16.msra.mxu0 %v1360_v1  ;;  %1301 = vmatprep.subr.bf16.mxu1 %v1375_v4 }
   0x8   :  { %1310 = vmatprep.subr.bf16.mxu0 %v1375_v4 }
   0xa   :  { %1185 = vmatmul.mubr.msk.bf16.vlgmr.msra.gmra.mrb[0].mxu0 %vm83_vm0, %v1362_v3  ;;  %1303 = vmatpush3.bf16.msra.mxu1 %v1302_v10  ;;  %v294_v10 = vld [vmem:[%s1685_s1] sm:$0x3] }
   0xb   :  { %1304 = vmatprep.subr.bf16.mxu1 %v1375_v4  ;;  %1217 = vmatprep.mubr.msk.f32.mxu0 %vm1376_vm5, %v1377_v51 }
   0xc   :  { %1312 = vmatpush3.bf16.msra.mxu0 %v1311_v58 }
   0xd   :  { %1313 = vmatprep.subr.bf16.mxu0 %v1375_v4 }
   0xe   :  { %1306 = vmatpush3.bf16.msra.mxu1 %v1305_v13  ;;  %v1317_v13 = vpack.c.bf16 %v384_v12, %v383_v11 }
   0xf   :  { %1307 = vmatprep.subr.bf16.mxu1 %v1375_v4 }
  0x12   :  { %1309 = vmatpush3.bf16.msra.mxu1 %v1308_v16  ;;  %v302_v16 = vld [vmem:[%s1684_s8 + $0x10] sm:$0xff] }
  0x13   :  { %1316 = vmatprep.subr.bf16.mxu1 %v1375_v4 }
  0xdd   :  { %v1186_v17 = vpop.f32.mrb[0].mxu0 }
  0xde   :  { %vm141_vm1 = vcmp.ge.f32.partialorder %v1186_v17, 0.0  ;;  %v145_v18 = vmul.f32 0.2, %v1186_v17  ;;  %v124_v19 = vpop.f32.mrb[1].mxu0 }
  0xdf   :  { %vm139_vm2 = vcmp.ge.f32.partialorder %v124_v19, 0.0  ;;  %v143_v20 = vmul.f32 0.2, %v124_v19  ;;  %v1187_v21 = vpop.f32.mrb[2].mxu0 }
  0xe0   :  { %v149_v22 = vsel %vm141_vm1, %v1186_v17, %v145_v18  ;;  %vm142_vm3 = vcmp.ge.f32.partialorder %v1187_v21, 0.0  ;;  %v146_v23 = vmul.f32 0.2, %v1187_v21  ;;  %v127_v24 = vpop.f32.mrb[3].mxu0  ;;  %v303_v17 = vld [vmem:[%s1684_s8 + $0x18] sm:$0xff]  ;;  %v385_v18 = vld [vmem:[%s1686_s5 + $0x10] sm:$0xff] }
  0xe1   :  { %vm140_vm4 = vcmp.ge.f32.partialorder %v127_v24, 0.0  ;;  %v147_v25 = vsel %vm139_vm2, %v124_v19, %v143_v20  ;;  %v144_v27 = vmul.f32 0.2, %v127_v24  ;;  %v160_v28 = vsel %vm83_vm0, %v149_v22, -inf  ;;  %v386_v20 = vld [vmem:[%s1686_s5 + $0x18] sm:$0xff] }
  0xe2   :  { %v150_v26 = vsel %vm142_vm3, %v1187_v21, %v146_v23  ;;  %v178_v29 = vsel %vm83_vm0, %v149_v22, 0.0  ;;  %v151_v35 = vsel %vm83_vm0, %v147_v25, -inf  ;;  %v169_v36 = vsel %vm83_vm0, %v147_v25, 0.0  ;;  %v304_v22 = vld [vmem:[%s1684_s8 + $0x20] sm:$0x1] }
  0xe3   :  { %v161_v30 = vsel %vm83_vm0, %v150_v26, -inf  ;;  %v179_v31 = vsel %vm83_vm0, %v150_v26, 0.0  ;;  %v148_v34 = vsel %vm140_vm4, %v127_v24, %v144_v27  ;;  %v1314_v19 = vpack.c.bf16 %v303_v17, %v302_v16  ;;  %v387_v23 = vld [vmem:[%s1686_s5 + $0x20] sm:$0x1] }
  0xe4   :  { %v162_v32 = vmax.f32 %v160_v28, %v161_v30  ;;  %v180_v33 = vadd.f32 %v179_v31, %v178_v29  ;;  %v152_v37 = vsel %vm83_vm0, %v148_v34, -inf  ;;  %v170_v38 = vsel %vm83_vm0, %v148_v34, 0.0  ;;  %v1112_v24 = vld [vmem:[%s1687_s4] ss:$0 sm:$0xff] }
  0xe5   :  { %v153_v41 = vmax.f32 %v151_v35, %v152_v37  ;;  %v171_v42 = vadd.f32 %v170_v38, %v169_v36  ;;  %v1320_v21 = vpack.c.bf16 %v386_v20, %v385_v18  ;;  %1315 = vmatpush3.bf16.msra.mxu0 %v1314_v19  ;;  %vm836_vm1 = vcmask 130048  }
  0xe6   :  { %v163_v39 = vrot.slane %v162_v32, 4  ;;  %v181_v40 = vrot.slane %v180_v33, 4  ;;  %1215 = vmatprep.subr.mxu0 %v1377_v51  ;;  %vm1100_vm4 = vcmask 1024  }
  0xe7   :  { %v154_v45 = vrot.slane %v153_v41, 4  ;;  %v172_v46 = vrot.slane %v171_v42, 4 }
  0xe8   :  { %v164_v43 = vmax.f32 %v162_v32, %v163_v39  ;;  %v182_v44 = vadd.f32 %v181_v40, %v180_v33 }
  0xe9   :  { %v155_v48 = vmax.f32 %v153_v41, %v154_v45  ;;  %v173_v49 = vadd.f32 %v172_v46, %v171_v42  ;;  %1216 = vmatpush3.msk.msra.mxu0 %vm309_vm8, %v304_v22  ;;  %v479_v42 = vld [vmem:[%s1688_s6] sm:$0xff]  ;;  %v482_v46 = vld [vmem:[%s1688_s6 + $0x18] sm:$0xff] }
  0xea   :  { %v165_v47 = vrot.slane %v164_v43, 2  ;;  %v183_v50 = vrot.slane %v182_v44, 2  ;;  %1322 = vmatprep.subr.bf16.mxu0 %v1375_v4  ;;  %v666_v22 = vld [vmem:[%s1690_s12] sm:$0xff] }
  0xeb   :  { %v156_v53 = vrot.slane %v155_v48, 2  ;;  %v174_v54 = vrot.slane %v173_v49, 2 }
  0xec   :  { %v166_v52 = vmax.f32 %v164_v43, %v165_v47  ;;  %v184_v55 = vadd.f32 %v183_v50, %v182_v44  ;;  %v480_v43 = vld [vmem:[%s1688_s6 + $0x8] sm:$0xff]  ;;  %v481_v44 = vld [vmem:[%s1688_s6 + $0x10] sm:$0xff] }
  0xed   :  { %v157_v59 = vmax.f32 %v155_v48, %v156_v53  ;;  %v175_v60 = vadd.f32 %v174_v54, %v173_v49  ;;  %v1323_v45 = vpack.c.bf16 %v480_v43, %v479_v42  ;;  %v1326_v47 = vpack.c.bf16 %v482_v46, %v481_v44 }
  0xee   :  { %v185_v61 = vrot.slane %v184_v55, 1  ;;  %v167_v62 = vrot.slane %v166_v52, 1 }
  0xef   :  { %v176_v63 = vrot.slane %v175_v60, 1  ;;  %v158_v2 = vrot.slane %v157_v59, 1 }
  0xf0   :  { %v186_v0 = vadd.f32 %v185_v61, %v184_v55  ;;  %v168_v1 = vmax.f32 %v166_v52, %v167_v62 }
  0xf1   :  { %v177_v3 = vadd.f32 %v176_v63, %v175_v60  ;;  %v159_v6 = vmax.f32 %v157_v59, %v158_v2  ;;  %v574_v2 = vld [vmem:[%s1689_s7 + $0x10] sm:$0xff] }
  0xf2   :  { %v189_v5 = vmul.f32 0.0625, %v186_v0  ;;  %v572_v0 = vld [vmem:[%s1689_s7] sm:$0xff] }
  0xf3   :  { %v188_v7 = vmul.f32 0.0625, %v177_v3  ;;  %v193_v8 = vsel %vm192_vm6, %v168_v1, %v159_v6  ;;  %v573_v1 = vld [vmem:[%s1689_s7 + $0x8] sm:$0xff] }
  0xf4   :  { %v1329_v3 = vpack.c.bf16 %v573_v1, %v572_v0 }
  0xf5   :  { %v197_v9 = vsel %vm192_vm6, %v189_v5, %v188_v7  ;;  %v575_v5 = vld [vmem:[%s1689_s7 + $0x18] sm:$0xff] }
  0xf6   :  { %198 = vrot.lane.b32.xlu0 %v197_v9, %s1378_s27  ;;  %v1332_v6 = vpack.c.bf16 %v575_v5, %v574_v2 }
  0xfa   :  { %296 = vrot.lane.b32.xlu0 %v294_v10, %s1378_s27 }
 0x168   :  { %v199_v14 = vpop.permute.xlu0 %198 }
 0x169   :  { %v201_v15 = vsel %vm83_vm0, %v193_v8, %v199_v14 }
 0x16a   :  { %1205 = vmatmul.mubr.msk.f32.vlgmr.msra.gmra.mrb[0].mxu1 %vm217_vm7, %v201_v15 }
 0x16b   :  { %1318 = vmatpush3.bf16.msra.mxu1 %v1317_v13  ;;  %1230 = vmatprep.mubr.msk.f32.mxu1 %vm1376_vm5, %v1377_v51 }
 0x16c   :  { %1319 = vmatprep.subr.bf16.mxu1 %v1375_v4  ;;  %v297_v29 = vpop.permute.xlu0 %296 }
 0x16f   :  { %1321 = vmatpush3.bf16.msra.mxu1 %v1320_v21 }
 0x170   :  { %1228 = vmatprep.subr.mxu1 %v1377_v51 }
 0x173   :  { %1229 = vmatpush3.msk.msra.mxu1 %vm309_vm8, %v387_v23  ;;  %v667_v23 = vld [vmem:[%s1690_s12 + $0x8] sm:$0xff] }
 0x174   :  { %1334 = vmatprep.subr.bf16.mxu1 %v1375_v4 }
 0x23d   :  { %v287_v25 = vpop.f32.mrb[0].mxu1 }
 0x23e   :  { %v288_v26 = vadd.f32 %v1112_v24, %v287_v25  ;;  %v1206_v27 = vpop.f32.mrb[1].mxu1  ;;  %v743_v24 = vld [vmem:[%s1691_s9] sm:$0xff]  ;;  %v1335_v25 = vpack.c.bf16 %v667_v23, %v666_v22 }
 0x23f   :  { %v668_v27 = vld [vmem:[%s1690_s12 + $0x10] sm:$0xff] }
 0x240   :  { %vm291_vm9 = vcmp.ge.f32.partialorder %v288_v26, 0.0  ;;  %v292_v28 = vmul.f32 0.2, %v288_v26 }
 0x242   :  { %v293_v30 = vsel %vm291_vm9, %v288_v26, %v292_v28  ;;  %v744_v26 = vld [vmem:[%s1691_s9 + $0x8] sm:$0xff]  ;;  %v669_v28 = vld [vmem:[%s1690_s12 + $0x18] sm:$0xff] }
 0x243   :  { %v299_v31 = vsel %vm83_vm0, %v293_v30, %v297_v29  ;;  %v1341_v29 = vpack.c.bf16 %v744_v26, %v743_v24  ;;  %v745_v30 = vld [vmem:[%s1691_s9 + $0x10] sm:$0xff]  ;;  %v1018_v24 = vld [vmem:[%s1694_s13] sm:$0xff] }
 0x244   :  { %1218 = vmatmul.mubr.msk.f32.vlgmr.msra.gmra.mrb[4].mxu0 %vm305_vm10, %v299_v31  ;;  %1231 = vmatmul.mubr.msk.f32.vlgmr.msra.gmra.mrb[2].mxu1 %vm305_vm10, %v299_v31  ;;  %v746_v31 = vld [vmem:[%s1691_s9 + $0x18] sm:$0xff] }
 0x245   :  { %1241 = vmatprep.mubr.msk.f32.mxu0 %vm1376_vm5, %v1377_v51  ;;  %1263 = vmatprep.mubr.msk.f32.mxu1 %vm1376_vm5, %v1377_v51 }
 0x246   :  { %1324 = vmatpush3.bf16.msra.mxu0 %v1323_v45  ;;  %1336 = vmatpush3.bf16.msra.mxu1 %v1335_v25  ;;  %v1019_v25 = vld [vmem:[%s1694_s13 + $0x8] sm:$0xff] }
 0x247   :  { %1325 = vmatprep.subr.bf16.mxu0 %v1375_v4  ;;  %1337 = vmatprep.subr.bf16.mxu1 %v1375_v4  ;;  %v1353_v26 = vpack.c.bf16 %v1019_v25, %v1018_v24 }
 0x24a   :  { %1327 = vmatpush3.bf16.msra.mxu0 %v1326_v47 }
 0x24b   :  { %1328 = vmatprep.subr.bf16.mxu0 %v1375_v4 }
 0x317   :  { %v1565_v32 = vpop.f32.mrb[4].mxu0  ;;  %v457_v33 = vpop.f32.mrb[2].mxu1 }
 0x318   :  { %v1219_v34 = vpop.f32.mrb[5].mxu0  ;;  %v1232_v35 = vpop.f32.mrb[3].mxu1  ;;  %v462_v36 = vsel %vm461_vm11, %v457_v33, 0.0 }
 0x319   :  { %463 = vadd.xlane.f32.xlu1 %v462_v36  ;;  %v1344_v34 = vpack.c.bf16 %v746_v31, %v745_v30 }
 0x3a6   :  { %v464_v37 = vpop.xlane.xlu1 %463 }
 0x3a7   :  { %v466_v38 = vmul.f32 0.03125, %v464_v37 }
 0x3a9   :  { %v467_v39 = vsub.f32 %v457_v33, %v466_v38  ;;  %v1338_v33 = vpack.c.bf16 %v669_v28, %v668_v27  ;;  %v20_v27 = vstv %s1695_s14 }
 0x3aa   :  { %21 = vst [vmem:[#allocation2] sm:$0x1] %v20_v27 }
 0x3ab   :  { %v468_v40 = vmul.f32 %v467_v39, %v467_v39  ;;  %1339 = vmatpush3.bf16.msra.mxu1 %v1338_v33 }
 0x3ac   :  { %1346 = vmatprep.subr.bf16.mxu1 %v1375_v4 }
 0x3ad   :  { %v469_v41 = vsel %vm461_vm11, %v468_v40, 0.0 }
 0x3ae   :  { %470 = vadd.xlane.f32.xlu1 %v469_v41 }
 0x43b   :  { %v471_v48 = vpop.xlane.xlu1 %470 }
 0x43c   :  { %v472_v49 = vmul.f32 0.03125, %v471_v48 }
 0x43e   :  { %v473_v50 = vadd.f32 1e-05, %v472_v49 }
 0x440   :  { %1363 = vrsqrt.f32 %v473_v50 }
 0x44a   :  { %v1364_v52 = vpop.eup %1363 }
 0x44b   :  { %v475_v53 = vmul.f32 %v1364_v52, %v467_v39 }
 0x44d   :  { %vm476_vm12 = vcmp.ge.f32.partialorder %v475_v53, 0.0  ;;  %v477_v54 = vmul.f32 0.2, %v475_v53 }
 0x44f   :  { %v478_v55 = vsel %vm476_vm12, %v475_v53, %v477_v54  ;;  %v834_v53 = vld [vmem:[%s1692_s10] sm:$0xff]  ;;  %v835_v54 = vld [vmem:[%s1692_s10 + $0x8] sm:$0xff] }
 0x450   :  { %1242 = vmatmul.mubr.msk.f32.vlgmr.msra.gmra.mrb[6].mxu0 %vm83_vm0, %v478_v55  ;;  %v1347_v55 = vpack.c.bf16 %v835_v54, %v834_v53 }
 0x451   :  { %1252 = vmatprep.mubr.msk.f32.mxu0 %vm1376_vm5, %v1377_v51  ;;  %1330 = vmatpush3.bf16.msra.mxu0 %v1329_v3 }
 0x452   :  { %1331 = vmatprep.subr.bf16.mxu0 %v1375_v4 }
 0x455   :  { %1333 = vmatpush3.bf16.msra.mxu0 %v1332_v6 }
 0x456   :  { %1340 = vmatprep.subr.bf16.mxu0 %v1375_v4 }
 0x523   :  { %v552_v56 = vpop.f32.mrb[6].mxu0 }
 0x524   :  { %v1243_v57 = vpop.f32.mrb[7].mxu0  ;;  %v556_v58 = vsel %vm461_vm11, %v552_v56, 0.0 }
 0x525   :  { %557 = vadd.xlane.f32.xlu0 %v556_v58 }
 0x5b2   :  { %v558_v59 = vpop.xlane.xlu0 %557 }
 0x5b3   :  { %v559_v60 = vmul.f32 0.03125, %v558_v59 }
 0x5b5   :  { %v560_v61 = vsub.f32 %v552_v56, %v559_v60 }
 0x5b7   :  { %v561_v62 = vmul.f32 %v560_v61, %v560_v61 }
 0x5b9   :  { %v562_v63 = vsel %vm461_vm11, %v561_v62, 0.0 }
 0x5ba   :  { %563 = vadd.xlane.f32.xlu1 %v562_v63 }
 0x647   :  { %v564_v7 = vpop.xlane.xlu1 %563 }
 0x648   :  { %v565_v8 = vmul.f32 0.03125, %v564_v7  ;;  %v926_v7 = vld [vmem:[%s1693_s11] sm:$0xff] }
 0x64a   :  { %v566_v9 = vadd.f32 1e-05, %v565_v8 }
 0x64c   :  { %1365 = vrsqrt.f32 %v566_v9 }
 0x656   :  { %v1366_v10 = vpop.eup %1365 }
 0x657   :  { %v568_v11 = vmul.f32 %v1366_v10, %v560_v61 }
 0x659   :  { %vm569_vm13 = vcmp.ge.f32.partialorder %v568_v11, 0.0  ;;  %v570_v12 = vmul.f32 0.2, %v568_v11 }
 0x65b   :  { %v571_v13 = vsel %vm569_vm13, %v568_v11, %v570_v12 }
 0x65c   :  { %1253 = vmatmul.mubr.msk.f32.vlgmr.msra.gmra.mrb[8].mxu0 %vm83_vm0, %v571_v13 }
 0x65d   :  { %1274 = vmatprep.mubr.msk.f32.mxu0 %vm1376_vm5, %v1377_v51  ;;  %1342 = vmatpush3.bf16.msra.mxu0 %v1341_v29 }
 0x65e   :  { %1343 = vmatprep.subr.bf16.mxu0 %v1375_v4 }
 0x661   :  { %1345 = vmatpush3.bf16.msra.mxu0 %v1344_v34 }
 0x662   :  { %1352 = vmatprep.subr.bf16.mxu0 %v1375_v4 }
 0x72f   :  { %v645_v14 = vpop.f32.mrb[8].mxu0 }
 0x730   :  { %v1254_v15 = vpop.f32.mrb[9].mxu0  ;;  %v649_v16 = vsel %vm461_vm11, %v645_v14, 0.0 }
 0x731   :  { %650 = vadd.xlane.f32.xlu1 %v649_v16 }
 0x7be   :  { %v651_v17 = vpop.xlane.xlu1 %650 }
 0x7bf   :  { %v652_v18 = vmul.f32 0.03125, %v651_v17 }
 0x7c1   :  { %v653_v19 = vsub.f32 %v645_v14, %v652_v18 }
 0x7c3   :  { %v654_v20 = vmul.f32 %v653_v19, %v653_v19 }
 0x7c5   :  { %v655_v21 = vsel %vm461_vm11, %v654_v20, 0.0 }
 0x7c6   :  { %656 = vadd.xlane.f32.xlu1 %v655_v21 }
 0x853   :  { %v657_v35 = vpop.xlane.xlu1 %656 }
 0x854   :  { %v658_v36 = vmul.f32 0.03125, %v657_v35 }
 0x856   :  { %v659_v37 = vadd.f32 1e-05, %v658_v36 }
 0x858   :  { %1367 = vrsqrt.f32 %v659_v37  ;;  %v1124_v37 = vld [vmem:[#allocation2] ss:$0 sm:$0xff] }
 0x862   :  { %v1368_v38 = vpop.eup %1367 }
 0x863   :  { %v661_v39 = vmul.f32 %v1368_v38, %v653_v19 }
 0x865   :  { %v662_v40 = vadd.f32 %v661_v39, %v1565_v32 }
 0x867   :  { %vm663_vm14 = vcmp.ge.f32.partialorder %v662_v40, 0.0  ;;  %v664_v41 = vmul.f32 0.2, %v662_v40 }
 0x869   :  { %v665_v42 = vsel %vm663_vm14, %v662_v40, %v664_v41 }
 0x86a   :  { %1264 = vmatmul.mubr.msk.f32.vlgmr.msra.gmra.mrb[4].mxu1 %vm83_vm0, %v665_v42  ;;  %1275 = vmatmul.mubr.msk.f32.vlgmr.msra.gmra.mrb[10].mxu0 %vm83_vm0, %v665_v42 }
 0x86b   :  { %1281 = vmatprep.mubr.msk.f32.mxu1 %vm1376_vm5, %v1377_v51  ;;  %1295 = vmatprep.mubr.msk.f32.mxu0 %vm1376_vm5, %v1377_v51 }
 0x86c   :  { %1348 = vmatpush3.bf16.msra.mxu1 %v1347_v55  ;;  %1354 = vmatpush3.bf16.msra.mxu0 %v1353_v26 }
 0x86d   :  { %1349 = vmatprep.subr.bf16.mxu1 %v1375_v4 }
 0x93d   :  { %v1642_v43 = vpop.f32.mrb[4].mxu1  ;;  %v813_v44 = vpop.f32.mrb[10].mxu0 }
 0x93e   :  { %v1265_v45 = vpop.f32.mrb[5].mxu1  ;;  %v1276_v46 = vpop.f32.mrb[11].mxu0  ;;  %v818_v32 = vsel %vm817_vm15, %v813_v44, 0.0 }
 0x93f   :  { %819 = vadd.xlane.f32.xlu1 %v818_v32 }
 0x9cc   :  { %v820_v47 = vpop.xlane.xlu1 %819 }
 0x9cd   :  { %v821_v48 = vmul.f32 0.0625, %v820_v47 }
 0x9cf   :  { %v822_v49 = vsub.f32 %v813_v44, %v821_v48 }
 0x9d1   :  { %v823_v50 = vmul.f32 %v822_v49, %v822_v49 }
 0x9d3   :  { %v824_v52 = vsel %vm817_vm15, %v823_v50, 0.0 }
 0x9d4   :  { %825 = vadd.xlane.f32.xlu1 %v824_v52 }
 0xa61   :  { %v826_v56 = vpop.xlane.xlu1 %825 }
 0xa62   :  { %v827_v57 = vmul.f32 0.0625, %v826_v56 }
 0xa64   :  { %v828_v58 = vadd.f32 1e-05, %v827_v57 }
 0xa66   :  { %1369 = vrsqrt.f32 %v828_v58 }
 0xa70   :  { %v1370_v59 = vpop.eup %1369 }
 0xa71   :  { %v830_v60 = vmul.f32 %v1370_v59, %v822_v49 }
 0xa73   :  { %vm831_vm0 = vcmp.ge.f32.partialorder %v830_v60, 0.0  ;;  %v832_v61 = vmul.f32 0.2, %v830_v60 }
 0xa75   :  { %v833_v62 = vsel %vm831_vm0, %v830_v60, %v832_v61 }
 0xa76   :  { %1282 = vmatmul.mubr.msk.f32.vlgmr.msra.gmra.mrb[6].mxu1 %vm836_vm1, %v833_v62 }
 0xa77   :  { %1288 = vmatprep.mubr.msk.f32.mxu1 %vm1376_vm5, %v1377_v51  ;;  %v927_v51 = vld [vmem:[%s1693_s11 + $0x8] sm:$0xff] }
 0xa78   :  { %v1350_v8 = vpack.c.bf16 %v927_v51, %v926_v7 }
 0xa7a   :  { %1351 = vmatpush3.bf16.msra.mxu1 %v1350_v8 }
 0xb49   :  { %v906_v63 = vpop.f32.mrb[6].mxu1 }
 0xb4a   :  { %v1283_v0 = vpop.f32.mrb[7].mxu1  ;;  %v910_v1 = vsel %vm817_vm15, %v906_v63, 0.0 }
 0xb4b   :  { %911 = vadd.xlane.f32.xlu1 %v910_v1 }
 0xbd8   :  { %v912_v4 = vpop.xlane.xlu1 %911 }
 0xbd9   :  { %v913_v2 = vmul.f32 0.0625, %v912_v4 }
 0xbdb   :  { %v914_v3 = vsub.f32 %v906_v63, %v913_v2 }
 0xbdd   :  { %v915_v5 = vmul.f32 %v914_v3, %v914_v3 }
 0xbdf   :  { %v916_v6 = vsel %vm817_vm15, %v915_v5, 0.0 }
 0xbe0   :  { %917 = vadd.xlane.f32.xlu1 %v916_v6 }
 0xc6d   :  { %v918_v9 = vpop.xlane.xlu1 %917 }
 0xc6e   :  { %v919_v10 = vmul.f32 0.0625, %v918_v9 }
 0xc70   :  { %v920_v11 = vadd.f32 1e-05, %v919_v10 }
 0xc72   :  { %1371 = vrsqrt.f32 %v920_v11 }
 0xc7c   :  { %v1372_v12 = vpop.eup %1371 }
 0xc7d   :  { %v922_v13 = vmul.f32 %v1372_v12, %v914_v3 }
 0xc7f   :  { %vm923_vm2 = vcmp.ge.f32.partialorder %v922_v13, 0.0  ;;  %v924_v14 = vmul.f32 0.2, %v922_v13 }
 0xc81   :  { %v925_v15 = vsel %vm923_vm2, %v922_v13, %v924_v14 }
 0xc82   :  { %1289 = vmatmul.mubr.msk.f32.vlgmr.msra.gmra.mrb[8].mxu1 %vm836_vm1, %v925_v15 }
 0xd55   :  { %v997_v16 = vpop.f32.mrb[8].mxu1 }
 0xd56   :  { %v1290_v17 = vpop.f32.mrb[9].mxu1  ;;  %v1001_v18 = vsel %vm817_vm15, %v997_v16, 0.0 }
 0xd57   :  { %1002 = vadd.xlane.f32.xlu1 %v1001_v18 }
 0xde4   :  { %v1003_v19 = vpop.xlane.xlu1 %1002 }
 0xde5   :  { %v1004_v20 = vmul.f32 0.0625, %v1003_v19 }
 0xde7   :  { %v1005_v21 = vsub.f32 %v997_v16, %v1004_v20 }
 0xde9   :  { %v1006_v22 = vmul.f32 %v1005_v21, %v1005_v21 }
 0xdeb   :  { %v1007_v23 = vsel %vm817_vm15, %v1006_v22, 0.0 }
 0xdec   :  { %1008 = vadd.xlane.f32.xlu0 %v1007_v23 }
 0xe79   :  { %v1009_v28 = vpop.xlane.xlu0 %1008 }
 0xe7a   :  { %v1010_v29 = vmul.f32 0.0625, %v1009_v28 }
 0xe7c   :  { %v1011_v30 = vadd.f32 1e-05, %v1010_v29 }
 0xe7e   :  { %1373 = vrsqrt.f32 %v1011_v30 }
 0xe88   :  { %v1374_v31 = vpop.eup %1373 }
 0xe89   :  { %v1013_v33 = vmul.f32 %v1374_v31, %v1005_v21 }
 0xe8b   :  { %v1014_v34 = vadd.f32 %v1013_v33, %v1642_v43 }
 0xe8d   :  { %vm1015_vm3 = vcmp.ge.f32.partialorder %v1014_v34, 0.0  ;;  %v1016_v35 = vmul.f32 0.2, %v1014_v34 }
 0xe8f   :  { %v1017_v36 = vsel %vm1015_vm3, %v1014_v34, %v1016_v35 }
 0xe90   :  { %1296 = vmatmul.mubr.msk.f32.vlgmr.msra.gmra.mrb[12].mxu0 %vm836_vm1, %v1017_v36 }
 0xf63   :  { %v1096_v38 = vpop.f32.mrb[12].mxu0 }
 0xf64   :  { %v1097_v39 = vadd.f32 %v1124_v37, %v1096_v38  ;;  %v1297_v40 = vpop.f32.mrb[13].mxu0 }
 0xf66   :  { %1101 = vst.msk [vmem:[%s1696_s15] sm:$0x3] %vm1100_vm4, %v1097_v39 }

</bundles_post_ra>
